<compile_context>
chip_gen: v6e
topology: v6e:2x2x1
jax: 0.10.0
libtpu: 0.0.40
codegen_flags: <defaults>
</compile_context>

<pallas_src>
import jax
import jax.numpy as jnp
from jax.experimental import pallas as pl
from jax.experimental.pallas import tpu as pltpu

NUM_BOND_TYPE = 6
NUM_BOND_DIRECTION = 3
NUM_ATOM_TYPE = 120
NUM_CHIRALITY_TAG = 3
LANE = 128
BN_EPS = 1e-5


def _round_up(x, m):
    return ((x + m - 1) // m) * m


# ------------------------------ kernel bodies -------------------------------- #
def _gin_layer(h, a_ref, ae_ref, w1_ref, b1_ref, w2_ref, b2_ref):
    """One GIN layer on the full VMEM-resident node tile (bf16 MXU, f32 accum).

    aggr_i = sum_{edges j->i} h_j + sum_{edges into i} edge_emb  ==  A @ h + AE
    followed by Linear(D,2D) -> ReLU -> Linear(2D,D) with eval-mode BN folded
    into w2 / b2."""
    aggr = jnp.dot(a_ref[...], h.astype(jnp.bfloat16),
                   preferred_element_type=jnp.float32)            # [Np, Dp] f32
    aggr = aggr + ae_ref[...].astype(jnp.float32)

    h1 = jnp.dot(aggr.astype(jnp.bfloat16), w1_ref[...],
                 preferred_element_type=jnp.float32) + b1_ref[...]
    h1 = jnp.maximum(h1, 0.0)
    h2 = jnp.dot(h1.astype(jnp.bfloat16), w2_ref[...],
                 preferred_element_type=jnp.float32) + b2_ref[...]
    return h2


def gin_last_kernel(h0_ref, a_ref, ae_ref, w1_ref, b1_ref, w2_ref, b2_ref,
                    out_ref):
    """JK='last': out_ref (constant block index) IS the layer-to-layer carry."""
    layer = pl.program_id(0)
    last = pl.num_programs(0) - 1

    @pl.when(layer == 0)
    def _():
        out_ref[...] = h0_ref[...]

    h2 = _gin_layer(out_ref[...], a_ref, ae_ref, w1_ref, b1_ref, w2_ref, b2_ref)

    @pl.when(layer != last)
    def _():
        out_ref[...] = jnp.maximum(h2, 0.0)        # ReLU on all but last layer

    @pl.when(layer == last)
    def _():
        out_ref[...] = h2                          # no ReLU on the last layer


def gin_all_kernel(h0_ref, a_ref, ae_ref, w1_ref, b1_ref, w2_ref, b2_ref,
                   out_ref, h_scr):
    """All-layer variant (needed for JK='concat'/'max'/'sum')."""
    layer = pl.program_id(0)
    last = pl.num_programs(0) - 1

    @pl.when(layer == 0)
    def _():
        h_scr[...] = h0_ref[...]

    h2 = _gin_layer(h_scr[...], a_ref, ae_ref, w1_ref, b1_ref, w2_ref, b2_ref)

    @pl.when(layer != last)
    def _():
        r = jnp.maximum(h2, 0.0)
        h_scr[...] = r
        out_ref[...] = r

    @pl.when(layer == last)
    def _():
        h_scr[...] = h2
        out_ref[...] = h2


# ------------------------------ pallas_call glue ------------------------------ #
def _in_specs(Np, Dp, D2, single_buffer):
    if single_buffer:
        def resident(shape):
            return pl.BlockSpec(shape, lambda l: (0,) * len(shape),
                                pipeline_mode=pl.Buffered(1))
    else:
        def resident(shape):
            return pl.BlockSpec(shape, lambda l: (0,) * len(shape))

    def per_layer(shape):
        return pl.BlockSpec((None,) + shape, lambda l: (l,) + (0,) * len(shape))

    return [
        resident((Np, Dp)),     # h0  (f32, fetched once, VMEM-resident)
        resident((Np, Np)),     # A   (bf16 adjacency counts, VMEM-resident)
        per_layer((Np, Dp)),    # AE_l (bf16 per-layer edge aggregates)
        per_layer((Dp, D2)),    # W1   (bf16)
        per_layer((1, D2)),     # B1   (f32)
        per_layer((D2, Dp)),    # W2   (bf16, BN folded)
        per_layer((1, Dp)),     # B2   (f32, BN folded)
    ]


def _vmem_limit(need_bytes):
    """Scoped-VMEM budget: >= 2x the estimated footprint, capped at ~85% of the
    chip's physical VMEM (generation-aware: 64 MiB on v7x, 128 MiB on v5e/v6e)."""
    try:
        cap = pltpu.get_tpu_info().vmem_capacity_bytes
    except Exception:
        cap = 64 * 1024 * 1024                      # conservative (v7x per-TC)
    return int(min(max(2 * need_bytes, 32 * 1024 * 1024), int(0.85 * cap)))


def _footprint(Np, Dp, D2):
    resident = 2 * Np * Dp * 4 + Np * Np * 2                       # h0, out, A
    per_layer = 2 * ((Np * Dp + Dp * D2 + D2 * Dp) * 2 + (D2 + Dp) * 4)
    return resident + per_layer


def fused_gin_last(h0, A, AE, W1, B1, W2, B2, *, single_buffer=True):
    """h0:[Np,Dp] f32, A:[Np,Np] bf16, AE:[L,Np,Dp] bf16, W1:[L,Dp,2Dp] bf16,
       B1:[L,1,2Dp] f32, W2:[L,2Dp,Dp] bf16, B2:[L,1,Dp] f32 -> [Np,Dp] f32."""
    L, Np, Dp = AE.shape
    D2 = W1.shape[-1]
    return pl.pallas_call(
        gin_last_kernel,
        out_shape=jax.ShapeDtypeStruct((Np, Dp), jnp.float32),
        grid=(L,),
        in_specs=_in_specs(Np, Dp, D2, single_buffer),
        out_specs=pl.BlockSpec((Np, Dp), lambda l: (0, 0)),   # resident carry
        compiler_params=pltpu.CompilerParams(
            dimension_semantics=("arbitrary",),               # layer carries state
            vmem_limit_bytes=_vmem_limit(_footprint(Np, Dp, D2))),
    )(h0, A, AE, W1, B1, W2, B2)


def fused_gin_all(h0, A, AE, W1, B1, W2, B2):
    """Same as fused_gin_last but emits every layer's h: -> [L,Np,Dp] f32."""
    L, Np, Dp = AE.shape
    D2 = W1.shape[-1]
    return pl.pallas_call(
        gin_all_kernel,
        out_shape=jax.ShapeDtypeStruct((L, Np, Dp), jnp.float32),
        grid=(L,),
        in_specs=_in_specs(Np, Dp, D2, single_buffer=False),
        out_specs=pl.BlockSpec((None, Np, Dp), lambda l: (l, 0, 0)),
        scratch_shapes=[pltpu.VMEM((Np, Dp), jnp.float32)],
        compiler_params=pltpu.CompilerParams(
            dimension_semantics=("arbitrary",),
            vmem_limit_bytes=_vmem_limit(_footprint(Np, Dp, D2) + Np * Dp * 4)),
    )(h0, A, AE, W1, B1, W2, B2)


# ----------------------------- parameter setup ------------------------------- #
def init_params(key, num_layer, emb_dim):
    keys = iter(jax.random.split(key, 16 + 8 * num_layer))

    def xavier(shape):
        bound = (6.0 / (shape[0] + shape[1])) ** 0.5
        return jax.random.uniform(next(keys), shape, jnp.float32, -bound, bound)

    params = {
        "x_emb1": xavier((NUM_ATOM_TYPE, emb_dim)),
        "x_emb2": xavier((NUM_CHIRALITY_TAG, emb_dim)),
        "layers": [],
    }
    for _ in range(num_layer):
        params["layers"].append({
            "edge_emb1": xavier((NUM_BOND_TYPE, emb_dim)),
            "edge_emb2": xavier((NUM_BOND_DIRECTION, emb_dim)),
            "w1": xavier((emb_dim, 2 * emb_dim)),
            "b1": jnp.zeros((1, 2 * emb_dim), jnp.float32),
            "w2": xavier((2 * emb_dim, emb_dim)),
            "b2": jnp.zeros((1, emb_dim), jnp.float32),
            # BatchNorm1d params / running stats at default init (eval mode)
            "gamma": jnp.ones((1, emb_dim), jnp.float32),
            "beta": jnp.zeros((1, emb_dim), jnp.float32),
            "running_mean": jnp.zeros((1, emb_dim), jnp.float32),
            "running_var": jnp.ones((1, emb_dim), jnp.float32),
        })
    return params


# ----------------------------- forward (glue) --------------------------------- #
def _graph_with_self_loops(x_nodes, edge_index, edge_attr):
    N = x_nodes.shape[0]
    self_loops = jnp.stack([jnp.arange(N, dtype=edge_index.dtype)] * 2)
    ei = jnp.concatenate([edge_index, self_loops], axis=1)
    self_attr = jnp.zeros((N, 2), edge_attr.dtype).at[:, 0].set(4)
    ea = jnp.concatenate([edge_attr, self_attr], axis=0)
    return ei, ea


def gnn_forward(params, x, edge_index, edge_attr, num_layer, emb_dim, JK="last"):
    N = x.shape[0]
    D = emb_dim
    Dp = _round_up(D, LANE)          # lane-dense feature axis
    Np = _round_up(N, LANE)          # aligned node axis
    pad_d = Dp - D

    # node embedding: x_embedding1(x[:,0]) + x_embedding2(x[:,1])
    h0 = (params["x_emb1"][x[:, 0]] + params["x_emb2"][x[:, 1]]).astype(jnp.float32)
    h0 = jnp.pad(h0, ((0, Np - N), (0, pad_d)))                        # [Np, Dp]

    # add self loops; self-loop edge_attr = [4, 0]
    ei, ea = _graph_with_self_loops(x, edge_index, edge_attr)
    # convention: x_j gathered from edge_index[0]; aggregated onto edge_index[1]
    src, dst = ei[0], ei[1]

    # dense adjacency counts A[i, j] = #edges j->i  (exact ints -> bf16 lossless)
    A = (jnp.zeros((Np, Np), jnp.float32).at[dst, src].add(1.0)
         ).astype(jnp.bfloat16)                                        # [Np, Np]

    # per-layer precomputed edge aggregates + BN-folded MLP weights
    AE_l, W1_l, B1_l, W2_l, B2_l = [], [], [], [], []
    for lp in params["layers"]:
        eemb = lp["edge_emb1"][ea[:, 0]] + lp["edge_emb2"][ea[:, 1]]   # [E_tot, D]
        ae = jnp.zeros((Np, D), jnp.float32).at[dst].add(eemb)         # scatter-add
        AE_l.append(jnp.pad(ae, ((0, 0), (0, pad_d))))

        bn_scale = lp["gamma"] / jnp.sqrt(lp["running_var"] + BN_EPS)  # [1, D]
        bn_shift = lp["beta"] - lp["running_mean"] * bn_scale
        w2f = lp["w2"] * bn_scale                                      # [2D, D]
        b2f = lp["b2"] * bn_scale + bn_shift                           # [1, D]

        W1_l.append(jnp.pad(lp["w1"], ((0, pad_d), (0, 2 * pad_d))))
        B1_l.append(jnp.pad(lp["b1"], ((0, 0), (0, 2 * pad_d))))
        W2_l.append(jnp.pad(w2f, ((0, 2 * pad_d), (0, pad_d))))
        B2_l.append(jnp.pad(b2f, ((0, 0), (0, pad_d))))

    AE = jnp.stack(AE_l).astype(jnp.bfloat16)        # [L, Np, Dp]
    W1 = jnp.stack(W1_l).astype(jnp.bfloat16)        # [L, Dp, 2Dp]
    B1 = jnp.stack(B1_l).astype(jnp.float32)         # [L, 1, 2Dp]
    W2 = jnp.stack(W2_l).astype(jnp.bfloat16)        # [L, 2Dp, Dp]
    B2 = jnp.stack(B2_l).astype(jnp.float32)         # [L, 1, Dp]

    if JK in ("last", "none"):
        try:
            h_last = fused_gin_last(h0, A, AE, W1, B1, W2, B2, single_buffer=True)
            h_last = jax.block_until_ready(h_last)
        except Exception:
            # pipeline_mode=pl.Buffered(1) unsupported on this JAX build -> retry
            h_last = fused_gin_last(h0, A, AE, W1, B1, W2, B2, single_buffer=False)
        return h_last[:N, :D]

    h_all = fused_gin_all(h0, A, AE, W1, B1, W2, B2)                   # [L, Np, Dp]
    h_layers = [h0[:N, :D]] + [h_all[l, :N, :D] for l in range(num_layer)]
    if JK == "concat":
        return jnp.concatenate(h_layers, axis=1)
    if JK == "max":
        return jnp.max(jnp.stack(h_layers, axis=0), axis=0)
    if JK == "sum":
        return jnp.sum(jnp.stack(h_layers, axis=0), axis=0)
    raise ValueError(JK)


# ----------------------- pure-JAX f32 reference (for check) ------------------- #
def gnn_forward_ref(params, x, edge_index, edge_attr, num_layer, emb_dim):
    N = x.shape[0]
    h = (params["x_emb1"][x[:, 0]] + params["x_emb2"][x[:, 1]]).astype(jnp.float32)
    ei, ea = _graph_with_self_loops(x, edge_index, edge_attr)
    src, dst = ei[0], ei[1]
    for layer, lp in enumerate(params["layers"]):
        eemb = lp["edge_emb1"][ea[:, 0]] + lp["edge_emb2"][ea[:, 1]]
        msg = h[src] + eemb
        aggr = jnp.zeros((N, emb_dim), jnp.float32).at[dst].add(msg)
        h1 = jnp.maximum(aggr @ lp["w1"] + lp["b1"], 0.0)
        h2 = h1 @ lp["w2"] + lp["b2"]
        h2 = ((h2 - lp["running_mean"]) / jnp.sqrt(lp["running_var"] + BN_EPS)
              * lp["gamma"] + lp["beta"])                              # eval BN
        h = h2 if layer == num_layer - 1 else jnp.maximum(h2, 0.0)
    return h


# ----------------------------------- main ------------------------------------ #
if __name__ == "__main__":
    num_layer = 2
    emb_dim = 32
    N = 8        # nodes
    E = 16       # directed edges

    key = jax.random.PRNGKey(0)
    k_params, k_atom, k_chir, k_src, k_dst, k_bt, k_bd = jax.random.split(key, 7)

    params = init_params(k_params, num_layer, emb_dim)

    # node categorical features [N, 2]: atom type, chirality tag
    x = jnp.stack([
        jax.random.randint(k_atom, (N,), 0, NUM_ATOM_TYPE),
        jax.random.randint(k_chir, (N,), 0, NUM_CHIRALITY_TAG),
    ], axis=1).astype(jnp.int32)

    # edge_index [2, E], edge_attr [E, 2]: bond type, bond direction
    edge_index = jnp.stack([
        jax.random.randint(k_src, (E,), 0, N),
        jax.random.randint(k_dst, (E,), 0, N),
    ], axis=0).astype(jnp.int32)
    edge_attr = jnp.stack([
        jax.random.randint(k_bt, (E,), 0, NUM_BOND_TYPE),
        jax.random.randint(k_bd, (E,), 0, NUM_BOND_DIRECTION),
    ], axis=1).astype(jnp.int32)

    out = gnn_forward(params, x, edge_index, edge_attr, num_layer, emb_dim, JK="last")
    out = jax.block_until_ready(out)
    assert out.shape == (N, emb_dim), out.shape
    assert bool(jnp.all(jnp.isfinite(out)))

    # correctness vs pure f32 reference (bf16 MXU inputs -> loose tolerance)
    ref = gnn_forward_ref(params, x, edge_index, edge_attr, num_layer, emb_dim)
    max_err = float(jnp.max(jnp.abs(out - ref)))
    tol = 0.05 * (float(jnp.max(jnp.abs(ref))) + 1.0)
    assert max_err < tol, f"max abs err {max_err} vs tolerance {tol}"

    print("KERNEL_OK")
</pallas_src>

<mosaic_0001>
module attributes {stable_mosaic.version = 11 : i64} {
  func.func @gin_last_kernel(%arg0: i32, %arg1: memref<128x128xf32, #tpu.memory_space<vmem>>, %arg2: memref<128x128xbf16, #tpu.memory_space<vmem>>, %arg3: memref<1x128x128xbf16, #tpu.memory_space<vmem>>, %arg4: memref<1x128x256xbf16, #tpu.memory_space<vmem>>, %arg5: memref<1x1x256xf32, #tpu.memory_space<vmem>>, %arg6: memref<1x256x128xbf16, #tpu.memory_space<vmem>>, %arg7: memref<1x1x128xf32, #tpu.memory_space<vmem>>, %arg8: memref<128x128xf32, #tpu.memory_space<vmem>>) attributes {dimension_semantics = [#tpu.dimension_semantics<arbitrary>], iteration_bounds = array<i64: 2>, scalar_prefetch = 0 : i64, scratch_operands = 0 : i64, tpu.core_type = #tpu.core_type<tc>, window_params = [{pipeline_mode = #tpu.pipeline_mode<synchronous>, transform_indices = @transform_0, window_bounds = array<i64: 128, 128>}, {pipeline_mode = #tpu.pipeline_mode<synchronous>, transform_indices = @transform_1, window_bounds = array<i64: 128, 128>}, {transform_indices = @transform_2, window_bounds = array<i64: 1, 128, 128>}, {transform_indices = @transform_3, window_bounds = array<i64: 1, 128, 256>}, {transform_indices = @transform_4, window_bounds = array<i64: 1, 1, 256>}, {transform_indices = @transform_5, window_bounds = array<i64: 1, 256, 128>}, {transform_indices = @transform_6, window_bounds = array<i64: 1, 1, 128>}, {pipeline_mode = #tpu.pipeline_mode<synchronous>, transform_indices = @transform_7, window_bounds = array<i64: 128, 128>}]} {
    %c0_i32 = arith.constant 0 : i32
    %0 = arith.cmpi eq, %arg0, %c0_i32 : i32
    %1 = arith.extui %0 : i1 to i32
    %c0_i32_0 = arith.constant 0 : i32
    %2 = arith.cmpi ne, %1, %c0_i32_0 : i32
    scf.if %2 {
      %c0_25 = arith.constant 0 : index
      %c0_26 = arith.constant 0 : index
      %35 = vector.load %arg1[%c0_25, %c0_26] : memref<128x128xf32, #tpu.memory_space<vmem>>, vector<128x128xf32>
      %c0_27 = arith.constant 0 : index
      %c0_28 = arith.constant 0 : index
      %36 = vector.load %arg8[%c0_27, %c0_28] : memref<128x128xf32, #tpu.memory_space<vmem>>, vector<128x128xf32>
      tpu.vector_store %arg8[%c0_27, %c0_28], %35 {strides = array<i32>} : memref<128x128xf32, #tpu.memory_space<vmem>>, vector<128x128xf32>,
    } else {
    }
    %c0 = arith.constant 0 : index
    %c0_1 = arith.constant 0 : index
    %3 = vector.load %arg8[%c0, %c0_1] : memref<128x128xf32, #tpu.memory_space<vmem>>, vector<128x128xf32>
    %c0_2 = arith.constant 0 : index
    %c0_3 = arith.constant 0 : index
    %4 = vector.load %arg2[%c0_2, %c0_3] : memref<128x128xbf16, #tpu.memory_space<vmem>>, vector<128x128xbf16>
    %5 = arith.truncf %3 : vector<128x128xf32> to vector<128x128xbf16>
    %cst = arith.constant dense<0.000000e+00> : vector<128x128xf32>
    %6 = tpu.matmul %4, %5, %cst {dimension_numbers = #tpu.dot_dimension_numbers<[1], [0], [0], [1], [0, 0, 1, 1], [], []>} : vector<128x128xbf16>, vector<128x128xbf16>, vector<128x128xf32> -> vector<128x128xf32>
    %c0_4 = arith.constant 0 : index
    %c0_5 = arith.constant 0 : index
    %c0_6 = arith.constant 0 : index
    %7 = vector.load %arg3[%c0_4, %c0_5, %c0_6] : memref<1x128x128xbf16, #tpu.memory_space<vmem>>, vector<1x128x128xbf16>
    %8 = vector.shape_cast %7 : vector<1x128x128xbf16> to vector<128x128xbf16>
    %9 = arith.extf %8 : vector<128x128xbf16> to vector<128x128xf32>
    %10 = arith.addf %6, %9 : vector<128x128xf32>
    %11 = arith.truncf %10 : vector<128x128xf32> to vector<128x128xbf16>
    %c0_7 = arith.constant 0 : index
    %c0_8 = arith.constant 0 : index
    %c0_9 = arith.constant 0 : index
    %12 = vector.load %arg4[%c0_7, %c0_8, %c0_9] : memref<1x128x256xbf16, #tpu.memory_space<vmem>>, vector<1x128x256xbf16>
    %13 = vector.shape_cast %12 : vector<1x128x256xbf16> to vector<128x256xbf16>
    %cst_10 = arith.constant dense<0.000000e+00> : vector<128x256xf32>
    %14 = tpu.matmul %11, %13, %cst_10 {dimension_numbers = #tpu.dot_dimension_numbers<[1], [0], [0], [1], [0, 0, 1, 1], [], []>} : vector<128x128xbf16>, vector<128x256xbf16>, vector<128x256xf32> -> vector<128x256xf32>
    %c0_11 = arith.constant 0 : index
    %c0_12 = arith.constant 0 : index
    %c0_13 = arith.constant 0 : index
    %15 = vector.load %arg5[%c0_11, %c0_12, %c0_13] : memref<1x1x256xf32, #tpu.memory_space<vmem>>, vector<1x1x256xf32>
    %16 = vector.shape_cast %15 : vector<1x1x256xf32> to vector<1x256xf32>
    %17 = vector.broadcast %16 : vector<1x256xf32> to vector<128x256xf32>
    %18 = arith.addf %14, %17 : vector<128x256xf32>
    %cst_14 = arith.constant 0.000000e+00 : f32
    %19 = vector.broadcast %cst_14 : f32 to vector<128x256xf32>
    %20 = arith.maximumf %18, %19 : vector<128x256xf32>
    %21 = arith.truncf %20 : vector<128x256xf32> to vector<128x256xbf16>
    %c0_15 = arith.constant 0 : index
    %c0_16 = arith.constant 0 : index
    %c0_17 = arith.constant 0 : index
    %22 = vector.load %arg6[%c0_15, %c0_16, %c0_17] : memref<1x256x128xbf16, #tpu.memory_space<vmem>>, vector<1x256x128xbf16>
    %23 = vector.shape_cast %22 : vector<1x256x128xbf16> to vector<256x128xbf16>
    %cst_18 = arith.constant dense<0.000000e+00> : vector<128x128xf32>
    %24 = tpu.matmul %21, %23, %cst_18 {dimension_numbers = #tpu.dot_dimension_numbers<[1], [0], [0], [1], [0, 0, 1, 1], [], []>} : vector<128x256xbf16>, vector<256x128xbf16>, vector<128x128xf32> -> vector<128x128xf32>
    %c0_19 = arith.constant 0 : index
    %c0_20 = arith.constant 0 : index
    %c0_21 = arith.constant 0 : index
    %25 = vector.load %arg7[%c0_19, %c0_20, %c0_21] : memref<1x1x128xf32, #tpu.memory_space<vmem>>, vector<1x1x128xf32>
    %26 = vector.shape_cast %25 : vector<1x1x128xf32> to vector<1x128xf32>
    %27 = vector.broadcast %26 : vector<1x128xf32> to vector<128x128xf32>
    %28 = arith.addf %24, %27 : vector<128x128xf32>
    %c1_i32 = arith.constant 1 : i32
    %29 = arith.cmpi ne, %arg0, %c1_i32 : i32
    %30 = arith.extui %29 : i1 to i32
    %c0_i32_22 = arith.constant 0 : i32
    %31 = arith.cmpi ne, %30, %c0_i32_22 : i32
    scf.if %31 {
      %cst_25 = arith.constant 0.000000e+00 : f32
      %35 = vector.broadcast %cst_25 : f32 to vector<128x128xf32>
      %36 = arith.maximumf %28, %35 : vector<128x128xf32>
      %c0_26 = arith.constant 0 : index
      %c0_27 = arith.constant 0 : index
      %37 = vector.load %arg8[%c0_26, %c0_27] : memref<128x128xf32, #tpu.memory_space<vmem>>, vector<128x128xf32>
      tpu.vector_store %arg8[%c0_26, %c0_27], %36 {strides = array<i32>} : memref<128x128xf32, #tpu.memory_space<vmem>>, vector<128x128xf32>,
    } else {
    }
    %c1_i32_23 = arith.constant 1 : i32
    %32 = arith.cmpi eq, %arg0, %c1_i32_23 : i32
    %33 = arith.extui %32 : i1 to i32
    %c0_i32_24 = arith.constant 0 : i32
    %34 = arith.cmpi ne, %33, %c0_i32_24 : i32
    scf.if %34 {
      %c0_25 = arith.constant 0 : index
      %c0_26 = arith.constant 0 : index
      %35 = vector.load %arg8[%c0_25, %c0_26] : memref<128x128xf32, #tpu.memory_space<vmem>>, vector<128x128xf32>
      tpu.vector_store %arg8[%c0_25, %c0_26], %28 {strides = array<i32>} : memref<128x128xf32, #tpu.memory_space<vmem>>, vector<128x128xf32>,
    } else {
    }
    return
  }
  func.func @transform_0(%arg0: i32) -> (i32, i32) {
    %c0_i32 = arith.constant 0 : i32
    %c0_i32_0 = arith.constant 0 : i32
    %c0_i32_1 = arith.constant 0 : i32
    return %c0_i32, %c0_i32_0 : i32, i32
  }
  func.func @transform_1(%arg0: i32) -> (i32, i32) {
    %c0_i32 = arith.constant 0 : i32
    %c0_i32_0 = arith.constant 0 : i32
    %c0_i32_1 = arith.constant 0 : i32
    return %c0_i32, %c0_i32_0 : i32, i32
  }
  func.func @transform_2(%arg0: i32) -> (i32, i32, i32) {
    %c0_i32 = arith.constant 0 : i32
    %c0_i32_0 = arith.constant 0 : i32
    %c0_i32_1 = arith.constant 0 : i32
    return %arg0, %c0_i32, %c0_i32_0 : i32, i32, i32
  }
  func.func @transform_3(%arg0: i32) -> (i32, i32, i32) {
    %c0_i32 = arith.constant 0 : i32
    %c0_i32_0 = arith.constant 0 : i32
    %c0_i32_1 = arith.constant 0 : i32
    return %arg0, %c0_i32, %c0_i32_0 : i32, i32, i32
  }
  func.func @transform_4(%arg0: i32) -> (i32, i32, i32) {
    %c0_i32 = arith.constant 0 : i32
    %c0_i32_0 = arith.constant 0 : i32
    %c0_i32_1 = arith.constant 0 : i32
    return %arg0, %c0_i32, %c0_i32_0 : i32, i32, i32
  }
  func.func @transform_5(%arg0: i32) -> (i32, i32, i32) {
    %c0_i32 = arith.constant 0 : i32
    %c0_i32_0 = arith.constant 0 : i32
    %c0_i32_1 = arith.constant 0 : i32
    return %arg0, %c0_i32, %c0_i32_0 : i32, i32, i32
  }
  func.func @transform_6(%arg0: i32) -> (i32, i32, i32) {
    %c0_i32 = arith.constant 0 : i32
    %c0_i32_0 = arith.constant 0 : i32
    %c0_i32_1 = arith.constant 0 : i32
    return %arg0, %c0_i32, %c0_i32_0 : i32, i32, i32
  }
  func.func @transform_7(%arg0: i32) -> (i32, i32) {
    %c0_i32 = arith.constant 0 : i32
    %c0_i32_0 = arith.constant 0 : i32
    %c0_i32_1 = arith.constant 0 : i32
    return %c0_i32, %c0_i32_0 : i32, i32
  }
}

module attributes {stable_mosaic.version = 11 : i64} {
  func.func @gin_last_kernel(%arg0: i32, %arg1: memref<128x128xf32, #tpu.memory_space<vmem>>, %arg2: memref<128x128xbf16, #tpu.memory_space<vmem>>, %arg3: memref<1x128x128xbf16, #tpu.memory_space<vmem>>, %arg4: memref<1x128x256xbf16, #tpu.memory_space<vmem>>, %arg5: memref<1x1x256xf32, #tpu.memory_space<vmem>>, %arg6: memref<1x256x128xbf16, #tpu.memory_space<vmem>>, %arg7: memref<1x1x128xf32, #tpu.memory_space<vmem>>, %arg8: memref<128x128xf32, #tpu.memory_space<vmem>>) attributes {dimension_semantics = [#tpu.dimension_semantics<arbitrary>], iteration_bounds = array<i64: 2>, scalar_prefetch = 0 : i64, scratch_operands = 0 : i64, tpu.core_type = #tpu.core_type<tc>, window_params = [{pipeline_mode = #tpu.pipeline_mode<synchronous>, transform_indices = @transform_0, window_bounds = array<i64: 128, 128>}, {pipeline_mode = #tpu.pipeline_mode<synchronous>, transform_indices = @transform_1, window_bounds = array<i64: 128, 128>}, {transform_indices = @transform_2, window_bounds = array<i64: 1, 128, 128>}, {transform_indices = @transform_3, window_bounds = array<i64: 1, 128, 256>}, {transform_indices = @transform_4, window_bounds = array<i64: 1, 1, 256>}, {transform_indices = @transform_5, window_bounds = array<i64: 1, 256, 128>}, {transform_indices = @transform_6, window_bounds = array<i64: 1, 1, 128>}, {pipeline_mode = #tpu.pipeline_mode<synchronous>, transform_indices = @transform_7, window_bounds = array<i64: 128, 128>}]} {
    %c0_i32 = arith.constant 0 : i32
    %0 = arith.cmpi eq, %arg0, %c0_i32 : i32
    %1 = arith.extui %0 : i1 to i32
    %c0_i32_0 = arith.constant 0 : i32
    %2 = arith.cmpi ne, %1, %c0_i32_0 : i32
    scf.if %2 {
      %c0_25 = arith.constant 0 : index
      %c0_26 = arith.constant 0 : index
      %35 = vector.load %arg1[%c0_25, %c0_26] : memref<128x128xf32, #tpu.memory_space<vmem>>, vector<128x128xf32>
      %c0_27 = arith.constant 0 : index
      %c0_28 = arith.constant 0 : index
      %36 = vector.load %arg8[%c0_27, %c0_28] : memref<128x128xf32, #tpu.memory_space<vmem>>, vector<128x128xf32>
      tpu.vector_store %arg8[%c0_27, %c0_28], %35 {strides = array<i32>} : memref<128x128xf32, #tpu.memory_space<vmem>>, vector<128x128xf32>,
    } else {
    }
    %c0 = arith.constant 0 : index
    %c0_1 = arith.constant 0 : index
    %3 = vector.load %arg8[%c0, %c0_1] : memref<128x128xf32, #tpu.memory_space<vmem>>, vector<128x128xf32>
    %c0_2 = arith.constant 0 : index
    %c0_3 = arith.constant 0 : index
    %4 = vector.load %arg2[%c0_2, %c0_3] : memref<128x128xbf16, #tpu.memory_space<vmem>>, vector<128x128xbf16>
    %5 = arith.truncf %3 : vector<128x128xf32> to vector<128x128xbf16>
    %cst = arith.constant dense<0.000000e+00> : vector<128x128xf32>
    %6 = tpu.matmul %4, %5, %cst {dimension_numbers = #tpu.dot_dimension_numbers<[1], [0], [0], [1], [0, 0, 1, 1], [], []>} : vector<128x128xbf16>, vector<128x128xbf16>, vector<128x128xf32> -> vector<128x128xf32>
    %c0_4 = arith.constant 0 : index
    %c0_5 = arith.constant 0 : index
    %c0_6 = arith.constant 0 : index
    %7 = vector.load %arg3[%c0_4, %c0_5, %c0_6] : memref<1x128x128xbf16, #tpu.memory_space<vmem>>, vector<1x128x128xbf16>
    %8 = vector.shape_cast %7 : vector<1x128x128xbf16> to vector<128x128xbf16>
    %9 = arith.extf %8 : vector<128x128xbf16> to vector<128x128xf32>
    %10 = arith.addf %6, %9 : vector<128x128xf32>
    %11 = arith.truncf %10 : vector<128x128xf32> to vector<128x128xbf16>
    %c0_7 = arith.constant 0 : index
    %c0_8 = arith.constant 0 : index
    %c0_9 = arith.constant 0 : index
    %12 = vector.load %arg4[%c0_7, %c0_8, %c0_9] : memref<1x128x256xbf16, #tpu.memory_space<vmem>>, vector<1x128x256xbf16>
    %13 = vector.shape_cast %12 : vector<1x128x256xbf16> to vector<128x256xbf16>
    %cst_10 = arith.constant dense<0.000000e+00> : vector<128x256xf32>
    %14 = tpu.matmul %11, %13, %cst_10 {dimension_numbers = #tpu.dot_dimension_numbers<[1], [0], [0], [1], [0, 0, 1, 1], [], []>} : vector<128x128xbf16>, vector<128x256xbf16>, vector<128x256xf32> -> vector<128x256xf32>
    %c0_11 = arith.constant 0 : index
    %c0_12 = arith.constant 0 : index
    %c0_13 = arith.constant 0 : index
    %15 = vector.load %arg5[%c0_11, %c0_12, %c0_13] : memref<1x1x256xf32, #tpu.memory_space<vmem>>, vector<1x1x256xf32>
    %16 = vector.shape_cast %15 : vector<1x1x256xf32> to vector<1x256xf32>
    %17 = vector.broadcast %16 : vector<1x256xf32> to vector<128x256xf32>
    %18 = arith.addf %14, %17 : vector<128x256xf32>
    %cst_14 = arith.constant 0.000000e+00 : f32
    %19 = vector.broadcast %cst_14 : f32 to vector<128x256xf32>
    %20 = arith.maximumf %18, %19 : vector<128x256xf32>
    %21 = arith.truncf %20 : vector<128x256xf32> to vector<128x256xbf16>
    %c0_15 = arith.constant 0 : index
    %c0_16 = arith.constant 0 : index
    %c0_17 = arith.constant 0 : index
    %22 = vector.load %arg6[%c0_15, %c0_16, %c0_17] : memref<1x256x128xbf16, #tpu.memory_space<vmem>>, vector<1x256x128xbf16>
    %23 = vector.shape_cast %22 : vector<1x256x128xbf16> to vector<256x128xbf16>
    %cst_18 = arith.constant dense<0.000000e+00> : vector<128x128xf32>
    %24 = tpu.matmul %21, %23, %cst_18 {dimension_numbers = #tpu.dot_dimension_numbers<[1], [0], [0], [1], [0, 0, 1, 1], [], []>} : vector<128x256xbf16>, vector<256x128xbf16>, vector<128x128xf32> -> vector<128x128xf32>
    %c0_19 = arith.constant 0 : index
    %c0_20 = arith.constant 0 : index
    %c0_21 = arith.constant 0 : index
    %25 = vector.load %arg7[%c0_19, %c0_20, %c0_21] : memref<1x1x128xf32, #tpu.memory_space<vmem>>, vector<1x1x128xf32>
    %26 = vector.shape_cast %25 : vector<1x1x128xf32> to vector<1x128xf32>
    %27 = vector.broadcast %26 : vector<1x128xf32> to vector<128x128xf32>
    %28 = arith.addf %24, %27 : vector<128x128xf32>
    %c1_i32 = arith.constant 1 : i32
    %29 = arith.cmpi ne, %arg0, %c1_i32 : i32
    %30 = arith.extui %29 : i1 to i32
    %c0_i32_22 = arith.constant 0 : i32
    %31 = arith.cmpi ne, %30, %c0_i32_22 : i32
    scf.if %31 {
      %cst_25 = arith.constant 0.000000e+00 : f32
      %35 = vector.broadcast %cst_25 : f32 to vector<128x128xf32>
      %36 = arith.maximumf %28, %35 : vector<128x128xf32>
      %c0_26 = arith.constant 0 : index
      %c0_27 = arith.constant 0 : index
      %37 = vector.load %arg8[%c0_26, %c0_27] : memref<128x128xf32, #tpu.memory_space<vmem>>, vector<128x128xf32>
      tpu.vector_store %arg8[%c0_26, %c0_27], %36 {strides = array<i32>} : memref<128x128xf32, #tpu.memory_space<vmem>>, vector<128x128xf32>,
    } else {
    }
    %c1_i32_23 = arith.constant 1 : i32
    %32 = arith.cmpi eq, %arg0, %c1_i32_23 : i32
    %33 = arith.extui %32 : i1 to i32
    %c0_i32_24 = arith.constant 0 : i32
    %34 = arith.cmpi ne, %33, %c0_i32_24 : i32
    scf.if %34 {
      %c0_25 = arith.constant 0 : index
      %c0_26 = arith.constant 0 : index
      %35 = vector.load %arg8[%c0_25, %c0_26] : memref<128x128xf32, #tpu.memory_space<vmem>>, vector<128x128xf32>
      tpu.vector_store %arg8[%c0_25, %c0_26], %28 {strides = array<i32>} : memref<128x128xf32, #tpu.memory_space<vmem>>, vector<128x128xf32>,
    } else {
    }
    return
  }
  func.func @transform_0(%arg0: i32) -> (i32, i32) {
    %c0_i32 = arith.constant 0 : i32
    %c0_i32_0 = arith.constant 0 : i32
    %c0_i32_1 = arith.constant 0 : i32
    return %c0_i32, %c0_i32_0 : i32, i32
  }
  func.func @transform_1(%arg0: i32) -> (i32, i32) {
    %c0_i32 = arith.constant 0 : i32
    %c0_i32_0 = arith.constant 0 : i32
    %c0_i32_1 = arith.constant 0 : i32
    return %c0_i32, %c0_i32_0 : i32, i32
  }
  func.func @transform_2(%arg0: i32) -> (i32, i32, i32) {
    %c0_i32 = arith.constant 0 : i32
    %c0_i32_0 = arith.constant 0 : i32
    %c0_i32_1 = arith.constant 0 : i32
    return %arg0, %c0_i32, %c0_i32_0 : i32, i32, i32
  }
  func.func @transform_3(%arg0: i32) -> (i32, i32, i32) {
    %c0_i32 = arith.constant 0 : i32
    %c0_i32_0 = arith.constant 0 : i32
    %c0_i32_1 = arith.constant 0 : i32
    return %arg0, %c0_i32, %c0_i32_0 : i32, i32, i32
  }
  func.func @transform_4(%arg0: i32) -> (i32, i32, i32) {
    %c0_i32 = arith.constant 0 : i32
    %c0_i32_0 = arith.constant 0 : i32
    %c0_i32_1 = arith.constant 0 : i32
    return %arg0, %c0_i32, %c0_i32_0 : i32, i32, i32
  }
  func.func @transform_5(%arg0: i32) -> (i32, i32, i32) {
    %c0_i32 = arith.constant 0 : i32
    %c0_i32_0 = arith.constant 0 : i32
    %c0_i32_1 = arith.constant 0 : i32
    return %arg0, %c0_i32, %c0_i32_0 : i32, i32, i32
  }
  func.func @transform_6(%arg0: i32) -> (i32, i32, i32) {
    %c0_i32 = arith.constant 0 : i32
    %c0_i32_0 = arith.constant 0 : i32
    %c0_i32_1 = arith.constant 0 : i32
    return %arg0, %c0_i32, %c0_i32_0 : i32, i32, i32
  }
  func.func @transform_7(%arg0: i32) -> (i32, i32) {
    %c0_i32 = arith.constant 0 : i32
    %c0_i32_0 = arith.constant 0 : i32
    %c0_i32_1 = arith.constant 0 : i32
    return %c0_i32, %c0_i32_0 : i32, i32
  }
}

</mosaic_0001>

<bundles_post_ra>
// kernel: tpu_custom_call.1
= control target key start
LH: loop header
LB: loop body
LE: loop exit
PB: predicated region body
PF: predicated region fallthrough
CT: control target
= control target key end

     0   :  { %s2421_s0 = inlined_call_operand.hbm [shape: f32[128,128], index: 0, kind: input, shape index: {}]   ;;  %s2422_s1 = inlined_call_operand.hbm [shape: bf16[128,128], index: 1, kind: input, shape index: {}]   ;;  %s2423_s2 = inlined_call_operand.hbm [shape: bf16[2,128,128], index: 2, kind: input, shape index: {}]   ;;  %s2424_s3 = inlined_call_operand.hbm [shape: bf16[2,128,256], index: 3, kind: input, shape index: {}]   ;;  %s2425_s4 = inlined_call_operand.vmem [shape: f32[2,1,256], index: 4, kind: input, shape index: {}]   ;;  %s2426_s5 = inlined_call_operand.hbm [shape: bf16[2,256,128], index: 5, kind: input, shape index: {}]   ;;  %s2427_s6 = inlined_call_operand.vmem [shape: f32[2,1,128], index: 6, kind: input, shape index: {}]   ;;  %s2428_s7 = inlined_call_operand.hbm [shape: f32[128,128], index: 7, kind: output, shape index: {}]  }
   0x1   :  { %2444 = sst [smem:[#allocation17_spill]] %s2421_s0 }
   0x2   :  { %12 = vsyncpa [#allocation3], 0 }
   0x3   :  { %13 = vsyncpa [#allocation6], 0 }
   0x4   :  { %14 = vsyncpa [#allocation4], 0  ;;  %s2007_s24 = smov 0   ;;  %s2009_s25 = smov 0  }
   0x5   :  { %s2011_s26 = smov 0   ;;  %s2013_s27 = smov 0  }
   0x6 LB: > { %s2026_s28 = sadd.s32 4294967295, %s1952_s27   ;;  %s2029_s29 = sadd.s32 1, %s1952_s27   ;;  %s1952_s27 = sphi %s2013_s27, %s2468_s27   ;;  %s1948_s26 = sphi %s2011_s26, %s2472_s26   ;;  %s1944_s25 = sphi %s2009_s25, %s2471_s25   ;;  %s1940_s24 = sphi %s2007_s24, %s2470_s24  }
   0x7   : > { %2445 = sst [smem:[#allocation15_spill]] %s2029_s29  ;;  %s66_s30 = ssub.s32 %s1952_s27, %s2029_s29 }
   0x8   : > { %s69_s8 = sadd.s32 1, %s1948_s26  ;;  %p67_p0 = scmp.eq.s32.totalorder %s66_s30, 0 }
   0x9   : > { %p76_p1 = scmp.ne.s32.totalorder %s1948_s26, %s1944_s25  ;;  %p77_p2 = scmp.eq.s32.totalorder %s1952_s27, 0 }
   0xa   : > { %p82_p3 = scmp.ne.s32.totalorder %s1944_s25, %s1940_s24  ;;  %p2429_p5 = scmp.eq.s32.totalorder %s2026_s28, 0 }
   0xb   : > { %s2039_s9 = scalar_select %p67_p0, %s1948_s26, %s69_s8  }
   0xc   : > { %p2041_p4 = por %p77_p2, %p76_p1  ;;  %p1376_p6 = scmp.ge.s32.totalorder %s1952_s27, 1 }
   0xd   : > { %2446 = sst [smem:[#allocation16_spill]] %s2039_s9  ;;  %p218_p7 = scmp.lt.s32.totalorder %s1952_s27, 3 }
   0xe   : > { %p2050_p8 = por %p2429_p5, %p82_p3  ;;  %s1954_s13 = smov [#allocation2]  }
   0xf   : > { %p2055_p10 = pnand %p1376_p6, %p218_p7  ;;  %s230_s14 = sshll.u32 %s1954_s13, 4  ;;  %s231_s14 = int_to_ptr.vmem [resolvable:$true] %s230_s14 }
  0x10   : > { %s2448_s11 = scalar_select %p2050_p8, 1, 0 }
  0x11   : > { %s2449_s12 = scalar_select %p2055_p10, 1, 0 }
  0x12   : > { %p1632_p11 = pneg %p2055_p10  ;;  %p1651_p13 = scmp.lt.s32.totalorder %s1952_s27, 2 }
  0x13   : > { %s1757_s17 = scalar_lea.vmem %s231_s14, 2048  ;;  %p1765_p7 = scmp.lt.s32.totalorder %s231_s14, %s231_s14 }
  0x14   : > { %p2063_p12 = pnand %p1632_p11, %p2429_p5  ;;  %p2070_p0 = pnand %p1651_p13, %p2041_p4 }
  0x15   : > { %p1758_p2 = scmp.ne.s32.totalorder %s231_s14, %s1757_s17  ;;  %p1766_p11 = scmp.lt.s32.totalorder %s1757_s17, %s1757_s17 }
  0x16   : > { %s2450_s15 = scalar_select %p2063_p12, 1, 0 }
  0x17   : > { %p2432_p1 = pneg %p2063_p12  ;;  %p1767_p9 = por %p1766_p11, %p1765_p7 }
  0x19   : > { %p1760_p3 = pnand %p1758_p2, %p2432_p1 }
  0x1b   : > { %p1761_p6 = pneg %p1760_p3 }
  0x1d   : > { %p1768_p5 = pnand %p1767_p9, %p1761_p6 }
  0x1f   : > { %1771 = shalt.err (!%p1768_p5)
}
  0x20   : > { %s2437_s18 = smov 128   ;;  %s2438_s19 = smov 8  }
  0x21   : > { %s2452_s0 = sld [smem:[#allocation17_spill]]  ;;  %s257_s22 = sand.u32 1, %s1952_s27  }
  0x22   : > { %s259_s23 = sand.u32 1, %s1948_s26   ;;  %s1444_s30 = sshll.u32 %s1952_s27, 10 }
  0x23   : > { %s1380_s24 = sshll.u32 %s259_s23, 6  ;;  %s2093_s13 = scalar_lea.hbm %s2423_s2, %s1444_s30 }
  0x24   : > { %s261_s17 = scalar_lea.vmem [#allocation7], %s1380_s24  ;;  %s2095_s29 = sshll.u32 %s259_s23, 7 }
  0x25   : > { %s268_s9 = sshll.u32 %s261_s17, 4  ;;  %s2099_s20 = scalar_lea.sflag [#allocation3], %s257_s22  ;;  %s2097_s9 = int_to_ptr.vmem [resolvable:$true] %s268_s9 }
  0x26   : > { %p2105_p5 = pneg %p2070_p0  ;;  %s1777_s23 = scalar_lea.hbm %s2423_s2, 2048 }
  0x27   : > { %1635 = dma.hbm_to_vmem [thread:$0]  (!%p2063_p12), %s2452_s0, 2048, %s231_s14, [#allocation3], %s2437_s18, %s2437_s18, %s2438_s19  }
  0x28   : > { %s1772_s14 = scalar_lea.hbm %s2093_s13, 1024  ;;  %p1778_p2 = scmp.lt.s32.totalorder %s2093_s13, %s2423_s2 }
  0x29   : > { %p1773_p4 = scmp.ne.s32.totalorder %s2093_s13, %s1772_s14  ;;  %p1779_p3 = scmp.lt.s32.totalorder %s1777_s23, %s1772_s14 }
  0x2b   : > { %p1775_p9 = pnand %p2105_p5, %p1773_p4  ;;  %p1780_p6 = por %p1779_p3, %p1778_p2 }
  0x2d   : > { %p1776_p13 = pneg %p1775_p9 }
  0x2f   : > { %p1781_p7 = pnand %p1780_p6, %p1776_p13 }
  0x31   : > { %1784 = shalt.err (!%p1781_p7)
}
  0x32   : > { %s1785_s22 = scalar_lea.vmem %s2097_s9, 1024  ;;  %s1957_s17 = smov [#allocation7]  }
  0x33   : > { %p1786_p11 = scmp.ne.s32.totalorder %s2097_s9, %s1785_s22  ;;  %s1790_s30 = sshll.u32 %s1957_s17, 4  ;;  %s1791_s30 = int_to_ptr.vmem [resolvable:$false] %s1790_s30 }
  0x34   : > { %s1792_s24 = scalar_lea.vmem %s1791_s30, 2048  ;;  %p1793_p1 = scmp.lt.s32.totalorder %s2097_s9, %s1791_s30 }
  0x35   : > { %p1788_p4 = pnand %p1786_p11, %p2105_p5  ;;  %p1794_p8 = scmp.lt.s32.totalorder %s1792_s24, %s1785_s22 }
  0x37   : > { %p1789_p9 = pneg %p1788_p4  ;;  %p1795_p10 = por %p1794_p8, %p1793_p1 }
  0x39   : > { %p1796_p12 = pnand %p1795_p10, %p1789_p9 }
  0x3b   : > { %1799 = shalt.err (!%p1796_p12)
}
  0x3c   : > { %s2439_s14 = smov 64   ;;  %s2441_s23 = smov 4  }
  0x3d   : > { %1642 = dma.hbm_to_vmem [thread:$0]  (!%p2070_p0), %s2093_s13, 1024, %s2097_s9, %s2099_s20, %s2439_s14, %s2439_s14, %s2441_s23  }
  0x3e   : > { %s2443_s8 = sshll.u32 %s1952_s27, 11  ;;  %s282_s10 = scalar_lea.vmem [#allocation8], %s2095_s29 }
  0x3f   : > { %s289_s22 = sshll.u32 %s282_s10, 4  ;;  %s2138_s24 = scalar_lea.hbm %s2424_s3, %s2443_s8  ;;  %s290_s22 = int_to_ptr.vmem [resolvable:$true] %s289_s22 }
  0x40   : > { %s1800_s18 = scalar_lea.hbm %s2138_s24, 2048  ;;  %s1805_s13 = scalar_lea.hbm %s2424_s3, 4096 }
  0x41   : > { %p1801_p8 = scmp.ne.s32.totalorder %s2138_s24, %s1800_s18  ;;  %p1806_p1 = scmp.lt.s32.totalorder %s2138_s24, %s2424_s3 }
  0x42   : > { %p1807_p13 = scmp.lt.s32.totalorder %s1805_s13, %s1800_s18 }
  0x43   : > { %p1803_p10 = pnand %p1801_p8, %p2105_p5 }
  0x44   : > { %p1808_p2 = por %p1807_p13, %p1806_p1 }
  0x45   : > { %p1804_p12 = pneg %p1803_p10 }
  0x47   : > { %p1809_p3 = pnand %p1808_p2, %p1804_p12 }
  0x49   : > { %1812 = shalt.err (!%p1809_p3)
}
  0x4a   : > { %s1813_s17 = scalar_lea.vmem %s290_s22, 2048  ;;  %s1960_s30 = smov [#allocation8]  }
  0x4b   : > { %p1814_p6 = scmp.ne.s32.totalorder %s290_s22, %s1813_s17  ;;  %s1818_s23 = sshll.u32 %s1960_s30, 4  ;;  %s1819_s23 = int_to_ptr.vmem [resolvable:$false] %s1818_s23 }
  0x4c   : > { %s1820_s8 = scalar_lea.vmem %s1819_s23, 4096  ;;  %p1821_p4 = scmp.lt.s32.totalorder %s290_s22, %s1819_s23 }
  0x4d   : > { %p1816_p7 = pnand %p1814_p6, %p2105_p5  ;;  %p1822_p9 = scmp.lt.s32.totalorder %s1820_s8, %s1813_s17 }
  0x4f   : > { %p1817_p11 = pneg %p1816_p7  ;;  %p1823_p8 = por %p1822_p9, %p1821_p4 }
  0x51   : > { %p1824_p10 = pnand %p1823_p8, %p1817_p11 }
  0x53   : > { %1827 = shalt.err (!%p1824_p10)
}
  0x54   : > { %s2454_s18 = smov 8   ;;  %s2455_s19 = smov 128  }
  0x55   : > { %1645 = dma.hbm_to_vmem [thread:$0]  (!%p2070_p0), %s2138_s24, 2048, %s290_s22, %s2099_s20, %s2455_s19, %s2455_s19, %s2454_s18  }
  0x56   : > { %s1961_s14 = smov [#allocation5]   ;;  %s2456_s13 = sshll.u32 %s1952_s27, 11 }
  0x57   : > { %s243_s9 = sshll.u32 %s1961_s14, 4  ;;  %s2165_s8 = scalar_lea.hbm %s2426_s5, %s2456_s13  ;;  %s244_s9 = int_to_ptr.vmem [resolvable:$true] %s243_s9 }
  0x58   : > { %s310_s17 = scalar_lea.vmem [#allocation9], %s2095_s29  ;;  %s1839_s0 = scalar_lea.vmem %s244_s9, 1024 }
  0x59   : > { %s317_s30 = sshll.u32 %s310_s17, 4  ;;  %p1840_p12 = scmp.ne.s32.totalorder %s244_s9, %s1839_s0  ;;  %s318_s30 = int_to_ptr.vmem [resolvable:$true] %s317_s30 }
  0x5a   : > { %p2457_p1 = scmp.ne.s32.totalorder %s2450_s15, 0  ;;  %p1847_p6 = scmp.lt.s32.totalorder %s244_s9, %s244_s9 }
  0x5b   : > { %p1848_p7 = scmp.lt.s32.totalorder %s1839_s0, %s1839_s0 }
  0x5c   : > { %p2458_p13 = pneg %p2457_p1 }
  0x5d   : > { %p1849_p11 = por %p1848_p7, %p1847_p6 }
  0x5e   : > { %p1842_p2 = pnand %p1840_p12, %p2458_p13 }
  0x60   : > { %p1843_p3 = pneg %p1842_p2 }
  0x62   : > { %p1850_p4 = pnand %p1849_p11, %p1843_p3 }
  0x64   : > { %1853 = shalt.err (!%p1850_p4)
}
  0x65   : > { %s2459_s27 = smov 4   ;;  %s2460_s22 = smov 64  }
  0x66   : > { %1638 = dma.hbm_to_vmem [thread:$0]  (!%p2457_p1), %s2422_s1, 1024, %s244_s9, [#allocation6], %s2460_s22, %s2460_s22, %s2459_s27  }
  0x67   : > { %s1854_s29 = scalar_lea.hbm %s2165_s8, 2048  ;;  %s1859_s15 = scalar_lea.hbm %s2426_s5, 4096 }
  0x68   : > { %p1855_p9 = scmp.ne.s32.totalorder %s2165_s8, %s1854_s29  ;;  %p1860_p12 = scmp.lt.s32.totalorder %s2165_s8, %s2426_s5 }
  0x69   : > { %p1861_p13 = scmp.lt.s32.totalorder %s1859_s15, %s1854_s29 }
  0x6a   : > { %p1857_p8 = pnand %p1855_p9, %p2105_p5 }
  0x6b   : > { %p1862_p2 = por %p1861_p13, %p1860_p12 }
  0x6c   : > { %p1858_p10 = pneg %p1857_p8 }
  0x6e   : > { %p1863_p3 = pnand %p1862_p2, %p1858_p10 }
  0x70   : > { %1866 = shalt.err (!%p1863_p3)
}
  0x71   : > { %s1867_s10 = scalar_lea.vmem %s318_s30, 2048  ;;  %s1962_s9 = smov [#allocation9]  }
  0x72   : > { %p1868_p1 = scmp.ne.s32.totalorder %s318_s30, %s1867_s10  ;;  %s1872_s23 = sshll.u32 %s1962_s9, 4  ;;  %s1873_s23 = int_to_ptr.vmem [resolvable:$false] %s1872_s23 }
  0x73   : > { %s1874_s17 = scalar_lea.vmem %s1873_s23, 4096  ;;  %p1875_p11 = scmp.lt.s32.totalorder %s318_s30, %s1873_s23 }
  0x74   : > { %p1870_p6 = pnand %p1868_p1, %p2105_p5  ;;  %p1876_p4 = scmp.lt.s32.totalorder %s1874_s17, %s1867_s10 }
  0x76   : > { %p1871_p7 = pneg %p1870_p6  ;;  %p1877_p9 = por %p1876_p4, %p1875_p11 }
  0x78   : > { %p1878_p8 = pnand %p1877_p9, %p1871_p7 }
  0x7a   : > { %1881 = shalt.err (!%p1878_p8)
}
  0x7b   : > { %1648 = dma.hbm_to_vmem [thread:$0]  (!%p2070_p0), %s2165_s8, 2048, %s318_s30, %s2099_s20, %s2460_s22, %s2460_s22, %s2459_s27  }
  0x7c   : > { %p2461_p5 = scmp.ne.s32.totalorder %s2449_s12, 0 }
  0x7d   : > { %p2462_p10 = scmp.eq.s32.totalorder (!%p2461_p5), %s2026_s28, 0 }
  0x7e   : > { %335 = sbr.rel (%p2461_p5) target bundleno = 908 (0x38c), region = 48 }
  0x83   : > { %1923 = dma.done.wait (%p2462_p10), [#allocation3], 2048   ;;  %p2463_p12 = pmov %p2462_p10 }
  0x84   : > { %p2464_p13 = pmov %p2462_p10 }
  0x85   : > { %1925 = vsyncadd (%p2463_p12), [#allocation3], 4294965248 }
  0x86   : > { %1927 = dma.done.wait (%p2464_p13), [#allocation6], 1024   ;;  %p2465_p2 = pmov %p2462_p10 }
  0x87   : > { %s345_s16 = sand.u32 1, %s2026_s28   ;;  %s347_s20 = sand.u32 1, %s1944_s25  }
  0x88   : > { %1929 = vsyncadd (%p2465_p2), [#allocation6], 4294966272  ;;  %s1392_s21 = sshll.u32 %s347_s20, 6  ;;  %s346_s12 = scalar_lea.sflag [#allocation3], %s345_s16 }
  0x89   : > { %s2211_s8 = scalar_lea.vmem [#allocation7], %s1392_s21  ;;  %p2466_p0 = scmp.ne.s32.totalorder %s2448_s11, 0 }
  0x8b   : > { %1931 = dma.done.wait (%p2466_p0), %s346_s12, 5120  }
  0x8c   : > { %1933 = vsyncadd (%p2466_p0), %s346_s12, 4294962176  ;;  %s1393_s30 = sshll.u32 %s347_s20, 7  ;;  %p410_p3 = scmp.lt.s32.totalorder %s2026_s28, 1 }
  0x8d   : > { %s2231_s11 = scalar_lea.vmem [#allocation8], %s1393_s30  ;;  %s2233_s14 = scalar_lea.vmem [#allocation9], %s1393_s30 }
  0x8e   : > { %s2219_s27 = scalar_select %p410_p3, %s2026_s28, 1 }
  0x8f   : > { %p2467_p1 = scmp.ne.s32.totalorder %s2026_s28, 0 }
  0x90   : > { %s1395_s22 = sshll.u32 %s2219_s27, 1  ;;  %s416_s29 = scalar_lea.vmem %s2427_s6, %s2219_s27 }
  0x91   : > { %s2229_s15 = scalar_lea.vmem %s2425_s4, %s1395_s22  ;;  %421 = sbr.rel (%p2467_p1) target bundleno = 159 (0x9f), region = 72 }
  0x96   : > { %v422_v0 = vld [vmem:[#allocation2] sm:$0xff]  ;;  %v423_v1 = vld [vmem:[#allocation2 + $0x8] sm:$0xff]  ;;  %v424_v2 = vld [vmem:[#allocation2 + $0x10] sm:$0xff] }
  0x97   : > { %438 = vst [vmem:[#allocation10] sm:$0xff] %v422_v0  ;;  %439 = vst [vmem:[#allocation10 + $0x8] sm:$0xff] %v423_v1  ;;  %v425_v3 = vld [vmem:[#allocation2 + $0x18] sm:$0xff]  ;;  %v426_v4 = vld [vmem:[#allocation2 + $0x20] sm:$0xff] }
  0x98   : > { %440 = vst [vmem:[#allocation10 + $0x10] sm:$0xff] %v424_v2  ;;  %v427_v5 = vld [vmem:[#allocation2 + $0x28] sm:$0xff]  ;;  %441 = vst [vmem:[#allocation10 + $0x18] sm:$0xff] %v425_v3  ;;  %v428_v6 = vld [vmem:[#allocation2 + $0x30] sm:$0xff] }
  0x99   : > { %442 = vst [vmem:[#allocation10 + $0x20] sm:$0xff] %v426_v4  ;;  %443 = vst [vmem:[#allocation10 + $0x28] sm:$0xff] %v427_v5  ;;  %v429_v7 = vld [vmem:[#allocation2 + $0x38] sm:$0xff]  ;;  %v430_v8 = vld [vmem:[#allocation2 + $0x40] sm:$0xff] }
  0x9a   : > { %444 = vst [vmem:[#allocation10 + $0x30] sm:$0xff] %v428_v6  ;;  %445 = vst [vmem:[#allocation10 + $0x38] sm:$0xff] %v429_v7  ;;  %v431_v9 = vld [vmem:[#allocation2 + $0x48] sm:$0xff]  ;;  %v432_v10 = vld [vmem:[#allocation2 + $0x50] sm:$0xff] }
  0x9b   : > { %446 = vst [vmem:[#allocation10 + $0x40] sm:$0xff] %v430_v8  ;;  %v433_v11 = vld [vmem:[#allocation2 + $0x58] sm:$0xff]  ;;  %447 = vst [vmem:[#allocation10 + $0x48] sm:$0xff] %v431_v9  ;;  %v434_v12 = vld [vmem:[#allocation2 + $0x60] sm:$0xff] }
  0x9c   : > { %448 = vst [vmem:[#allocation10 + $0x50] sm:$0xff] %v432_v10  ;;  %449 = vst [vmem:[#allocation10 + $0x58] sm:$0xff] %v433_v11  ;;  %v435_v13 = vld [vmem:[#allocation2 + $0x68] sm:$0xff]  ;;  %v436_v14 = vld [vmem:[#allocation2 + $0x70] sm:$0xff] }
  0x9d   : > { %450 = vst [vmem:[#allocation10 + $0x60] sm:$0xff] %v434_v12  ;;  %451 = vst [vmem:[#allocation10 + $0x68] sm:$0xff] %v435_v13  ;;  %v437_v15 = vld [vmem:[#allocation2 + $0x78] sm:$0xff] }
  0x9e   : > { %452 = vst [vmem:[#allocation10 + $0x70] sm:$0xff] %v436_v14  ;;  %453 = vst [vmem:[#allocation10 + $0x78] sm:$0xff] %v437_v15 }
  0x9f PF: > { %v1698_v27 = vld [vmem:[#allocation5] sm:$0xff]   ;;  %v1706_v34 = vld [vmem:[%s2231_s11 + $0x74] ss:$8 sps:$4 sm:$0xff]   ;;  %v1708_v35 = vld [vmem:[%s2231_s11 + $0x70] ss:$8 sps:$4 sm:$0xff]   ;;  %v1963_v0 = vmov 0  }
  0xa0   : > { %1582 = vmatprep.mubr.bf16.mxu0 %v1698_v27  ;;  %v458_v31 = vld [vmem:[#allocation10 + $0x20] sm:$0xff]  ;;  %v459_v33 = vld [vmem:[#allocation10 + $0x28] sm:$0xff]  ;;  %v456_v37 = vld [vmem:[#allocation10 + $0x10] sm:$0xff]  ;;  %787 = vmatprep.subr.bf16.mxu1 %v1706_v34  ;;  %p1438_p6 = scmp.eq.s32.totalorder %s2026_s28, 1 }
  0xa1   : > { %v460_v29 = vld [vmem:[#allocation10 + $0x30] sm:$0xff]  ;;  %v461_v30 = vld [vmem:[#allocation10 + $0x38] sm:$0xff]  ;;  %v1709_v36 = vld [vmem:[%s2231_s11 + $0x64] ss:$8 sps:$4 sm:$0xff]   ;;  %v488_v38 = vpack.c.bf16 %v459_v33, %v458_v31  ;;  %788 = vmatpush1.bf16.msra.mxu1 %v1708_v35  ;;  %819 = vmatprep.mubr.bf16.mxu1 %v1963_v0 }
  0xa2   : > { %v462_v24 = vld [vmem:[#allocation10 + $0x40] sm:$0xff]  ;;  %v463_v26 = vld [vmem:[#allocation10 + $0x48] sm:$0xff]  ;;  %v489_v32 = vpack.c.bf16 %v461_v30, %v460_v29  ;;  %v457_v40 = vld [vmem:[#allocation10 + $0x18] sm:$0xff]  ;;  %789 = vmatprep.subr.bf16.mxu1 %v1709_v36 }
  0xa3   : > { %v464_v22 = vld [vmem:[#allocation10 + $0x50] sm:$0xff]  ;;  %v465_v23 = vld [vmem:[#allocation10 + $0x58] sm:$0xff]  ;;  %v490_v28 = vpack.c.bf16 %v463_v26, %v462_v24  ;;  %v1711_v39 = vld [vmem:[%s2231_s11 + $0x60] ss:$8 sps:$4 sm:$0xff]   ;;  %v487_v45 = vpack.c.bf16 %v457_v40, %v456_v37 }
  0xa4   : > { %v466_v18 = vld [vmem:[#allocation10 + $0x60] sm:$0xff]  ;;  %v467_v20 = vld [vmem:[#allocation10 + $0x68] sm:$0xff]  ;;  %v491_v25 = vpack.c.bf16 %v465_v23, %v464_v22  ;;  %v1712_v41 = vld [vmem:[%s2231_s11 + $0x54] ss:$8 sps:$4 sm:$0xff]  }
  0xa5   : > { %v468_v16 = vld [vmem:[#allocation10 + $0x70] sm:$0xff]  ;;  %v469_v17 = vld [vmem:[#allocation10 + $0x78] sm:$0xff]  ;;  %v492_v21 = vpack.c.bf16 %v467_v20, %v466_v18  ;;  %v454_v42 = vld [vmem:[#allocation10] sm:$0xff]  ;;  %790 = vmatpush1.bf16.msra.mxu1 %v1711_v39 }
  0xa6   : > { %v493_v19 = vpack.c.bf16 %v469_v17, %v468_v16  ;;  %v455_v43 = vld [vmem:[#allocation10 + $0x8] sm:$0xff]  ;;  %v1714_v44 = vld [vmem:[%s2231_s11 + $0x50] ss:$8 sps:$4 sm:$0xff]   ;;  %791 = vmatprep.subr.bf16.mxu1 %v1712_v41  ;;  %v1718_v48 = vld [vmem:[%s2231_s11 + $0x34] ss:$8 sps:$4 sm:$0xff]  }
  0xa7   : > { %v1715_v46 = vld [vmem:[%s2231_s11 + $0x44] ss:$8 sps:$4 sm:$0xff]   ;;  %v1717_v47 = vld [vmem:[%s2231_s11 + $0x40] ss:$8 sps:$4 sm:$0xff]   ;;  %v486_v49 = vpack.c.bf16 %v455_v43, %v454_v42  ;;  %v1720_v50 = vld [vmem:[%s2231_s11 + $0x30] ss:$8 sps:$4 sm:$0xff]  }
  0xa8   : > { %1566 = vmatprep.subr.bf16.mxu0 %v493_v19  ;;  %v1721_v51 = vld [vmem:[%s2231_s11 + $0x24] ss:$8 sps:$4 sm:$0xff]   ;;  %v1700_v53 = vld [vmem:[#allocation5 + $0x10] sm:$0xff]   ;;  %v1701_v54 = vld [vmem:[#allocation5 + $0x18] sm:$0xff]  }
  0xa9   : > { %1567 = vmatpush3.bf16.msra.mxu0 %v493_v19  ;;  %792 = vmatpush1.bf16.msra.mxu1 %v1714_v44  ;;  %v1699_v52 = vld [vmem:[#allocation5 + $0x8] sm:$0xff]   ;;  %v1702_v55 = vld [vmem:[#allocation5 + $0x20] sm:$0xff]   ;;  %v1704_v57 = vld [vmem:[#allocation5 + $0x30] sm:$0xff]  }
  0xaa   : > { %1568 = vmatprep.subr.bf16.mxu0 %v492_v21  ;;  %793 = vmatprep.subr.bf16.mxu1 %v1715_v46  ;;  %v1703_v56 = vld [vmem:[#allocation5 + $0x28] sm:$0xff]   ;;  %v1705_v58 = vld [vmem:[#allocation5 + $0x38] sm:$0xff]   ;;  %v1732_v3 = vld [vmem:[%s2233_s14 + $0x70] sm:$0xff]  }
  0xab   : > { %v1723_v59 = vld [vmem:[%s2231_s11 + $0x20] ss:$8 sps:$4 sm:$0xff]   ;;  %v1724_v60 = vld [vmem:[%s2231_s11 + $0x14] ss:$8 sps:$4 sm:$0xff]   ;;  %v1726_v61 = vld [vmem:[%s2231_s11 + $0x10] ss:$8 sps:$4 sm:$0xff]  }
  0xac   : > { %v1727_v62 = vld [vmem:[%s2231_s11 + $0x4] ss:$8 sps:$4 sm:$0xff]   ;;  %v1729_v63 = vld [vmem:[%s2231_s11] ss:$8 sps:$4 sm:$0xff]   ;;  %v1730_v1 = vld [vmem:[%s2233_s14 + $0x78] sm:$0xff]  }
  0xad   : > { %1569 = vmatpush3.bf16.msra.mxu0 %v492_v21  ;;  %794 = vmatpush1.bf16.msra.mxu1 %v1717_v47  ;;  %v1731_v2 = vld [vmem:[%s2233_s14 + $0x38] sm:$0xff]   ;;  %v1733_v4 = vld [vmem:[%s2233_s14 + $0x30] sm:$0xff]   ;;  %v1734_v5 = vld [vmem:[%s2233_s14 + $0x68] sm:$0xff]  }
  0xae   : > { %1570 = vmatprep.subr.bf16.mxu0 %v491_v25  ;;  %795 = vmatprep.subr.bf16.mxu1 %v1718_v48  ;;  %v1735_v6 = vld [vmem:[%s2233_s14 + $0x28] sm:$0xff]   ;;  %v1736_v7 = vld [vmem:[%s2233_s14 + $0x60] sm:$0xff]   ;;  %v1738_v9 = vld [vmem:[%s2233_s14 + $0x58] sm:$0xff]  }
  0xaf   : > { %v1737_v8 = vld [vmem:[%s2233_s14 + $0x20] sm:$0xff]   ;;  %v1739_v10 = vld [vmem:[%s2233_s14 + $0x18] sm:$0xff]   ;;  %v1479_v20 = vld [vmem:[%s2211_s8 + $0x8] sm:$0xff]  }
  0xb0   : > { %v1448_v12 = vld [vmem:[%s2211_s8] sm:$0xff]   ;;  %v1454_v22 = vunpack.c.h.bf16 %v1479_v20  ;;  %v1480_v27 = vld [vmem:[%s2211_s8 + $0x10] sm:$0xff]   ;;  %v1481_v36 = vld [vmem:[%s2211_s8 + $0x18] sm:$0xff]  }
  0xb1   : > { %1571 = vmatpush3.bf16.msra.mxu0 %v491_v25  ;;  %796 = vmatpush1.bf16.msra.mxu1 %v1720_v50  ;;  %v1449_v14 = vunpack.c.l.bf16 %v1448_v12  ;;  %v1450_v15 = vunpack.c.h.bf16 %v1448_v12  ;;  %v1453_v25 = vunpack.c.l.bf16 %v1479_v20  ;;  %v1457_v31 = vunpack.c.l.bf16 %v1480_v27  ;;  %v1482_v44 = vld [vmem:[%s2211_s8 + $0x20] sm:$0xff]   ;;  %v1740_v12 = vld [vmem:[%s2233_s14 + $0x50] sm:$0xff]  }
  0xb2   : > { %1572 = vmatprep.subr.bf16.mxu0 %v490_v28  ;;  %797 = vmatprep.subr.bf16.mxu1 %v1721_v51  ;;  %v1462_v39 = vunpack.c.h.bf16 %v1481_v36  ;;  %v1465_v47 = vunpack.c.l.bf16 %v1482_v44  ;;  %v1466_v48 = vunpack.c.h.bf16 %v1482_v44 }
  0xb5   : > { %1573 = vmatpush3.bf16.msra.mxu0 %v490_v28  ;;  %798 = vmatpush1.bf16.msra.mxu1 %v1723_v59 }
  0xb6   : > { %1574 = vmatprep.subr.bf16.mxu0 %v489_v32  ;;  %799 = vmatprep.subr.bf16.mxu1 %v1724_v60  ;;  %v1484_v60 = vld [vmem:[%s2211_s8 + $0x30] sm:$0xff]  }
  0xb9   : > { %1575 = vmatpush3.bf16.msra.mxu0 %v489_v32  ;;  %800 = vmatpush1.bf16.msra.mxu1 %v1726_v61  ;;  %v1458_v32 = vunpack.c.h.bf16 %v1480_v27 }
  0xba   : > { %1576 = vmatprep.subr.bf16.mxu0 %v488_v38  ;;  %801 = vmatprep.subr.bf16.mxu1 %v1727_v62 }
  0xbd   : > { %1577 = vmatpush3.bf16.msra.mxu0 %v488_v38  ;;  %802 = vmatpush1.bf16.msra.mxu1 %v1729_v63  ;;  %v1461_v38 = vunpack.c.l.bf16 %v1481_v36  ;;  %v1473_v63 = vunpack.c.l.bf16 %v1484_v60 }
  0xbe   : > { %1578 = vmatprep.subr.bf16.mxu0 %v487_v45  ;;  %1598 = vmatprep.subr.bf16.mxu1 %v1730_v1 }
  0xc1   : > { %1579 = vmatpush3.bf16.msra.mxu0 %v487_v45 }
  0xc2   : > { %1580 = vmatprep.subr.bf16.mxu0 %v486_v49 }
  0xc5   : > { %1581 = vmatpush3.bf16.msra.mxu0 %v486_v49 }
  0xc6   : > { %1502 = vmatprep.subr.bf16.mxu0 %v1730_v1  ;;  %v1474_v1 = vunpack.c.h.bf16 %v1484_v60 }
  0xc8   : > { %1583 = vmatmul.mubr.bf16.vlgmr.msra.gmra.mxu0 %v1699_v52  ;;  %v1483_v52 = vld [vmem:[%s2211_s8 + $0x28] sm:$0xff]  }
  0xc9   : > { %1586 = vmatprep.mubr.bf16.mxu0 %v1700_v53  ;;  %1503 = vmatpush3.bf16.msra.mxu0 %v1731_v2 }
  0xca   : > { %1504 = vmatprep.subr.bf16.mxu0 %v1732_v3 }
  0xcd   : > { %1505 = vmatpush3.bf16.msra.mxu0 %v1733_v4 }
  0xce   : > { %1506 = vmatprep.subr.bf16.mxu0 %v1734_v5 }
  0xd0   : > { %1587 = vmatmul.mubr.bf16.gmra.mxu0 %v1701_v54  ;;  %v1469_v54 = vunpack.c.l.bf16 %v1483_v52 }
  0xd1   : > { %1590 = vmatprep.mubr.bf16.mxu0 %v1702_v55  ;;  %1507 = vmatpush3.bf16.msra.mxu0 %v1735_v6  ;;  %v1470_v55 = vunpack.c.h.bf16 %v1483_v52 }
  0xd2   : > { %1508 = vmatprep.subr.bf16.mxu0 %v1736_v7 }
  0xd5   : > { %1509 = vmatpush3.bf16.msra.mxu0 %v1737_v8 }
  0xd6   : > { %1510 = vmatprep.subr.bf16.mxu0 %v1738_v9 }
  0xd8   : > { %1591 = vmatmul.mubr.bf16.gmra.mxu0 %v1703_v56 }
  0xd9   : > { %1594 = vmatprep.mubr.bf16.mxu0 %v1704_v57  ;;  %1511 = vmatpush3.bf16.msra.mxu0 %v1739_v10 }
  0xda   : > { %1512 = vmatprep.subr.bf16.mxu0 %v1740_v12 }
  0xe0   : > { %1595 = vmatmul.mubr.bf16.gmra.mxu0 %v1705_v58 }
 0x188   : > { %v1584_v11 = vpop.f32.mrf.mxu0 }
 0x189   : > { %v617_v29 = vadd.f32 %v1584_v11, %v1453_v25 }
 0x18a   : > { %v608_v13 = vpop.f32.mrf.mxu0 }
 0x18b   : > { %v609_v18 = vadd.f32 %v1449_v14, %v608_v13  ;;  %v1741_v13 = vld [vmem:[%s2233_s14 + $0x10] sm:$0xff]   ;;  %v1742_v14 = vld [vmem:[%s2233_s14 + $0x48] sm:$0xff]  }
 0x18c   : > { %v1585_v16 = vpop.f32.mrf.mxu0  ;;  %1513 = vmatpush3.bf16.msra.mxu0 %v1741_v13 }
 0x18d   : > { %v620_v26 = vadd.f32 %v1585_v16, %v1454_v22  ;;  %1514 = vmatprep.subr.bf16.mxu0 %v1742_v14  ;;  %v1745_v16 = vld [vmem:[%s2233_s14] sm:$0xff]  }
 0x18e   : > { %v611_v17 = vpop.f32.mrf.mxu0 }
 0x18f   : > { %v612_v19 = vadd.f32 %v1450_v15, %v611_v17  ;;  %v672_v30 = vpack.c.bf16 %v620_v26, %v617_v29  ;;  %v1743_v15 = vld [vmem:[%s2233_s14 + $0x8] sm:$0xff]   ;;  %v697_v17 = vlaneseq }
 0x190   : > { %v1588_v21 = vpop.f32.mrf.mxu0  ;;  %1515 = vmatpush3.bf16.msra.mxu0 %v1743_v15 }
 0x191   : > { %v671_v23 = vpack.c.bf16 %v612_v19, %v609_v18  ;;  %v633_v42 = vadd.f32 %v1588_v21, %v1461_v38  ;;  %v698_v18 = vshrl.u32 %v697_v17, 7  ;;  %v695_v21 = vld [vmem:[%s2229_s15] sm:$0x3] }
 0x192   : > { %v624_v24 = vpop.f32.mrf.mxu0 }
 0x193   : > { %820 = vmatmul.mubr.bf16.vlgmr.msra.gmra.mxu1 %v671_v23  ;;  %v625_v34 = vadd.f32 %v1457_v31, %v624_v24  ;;  %v703_v19 = vsub.s32 1, %v698_v18  ;;  %v699_v20 = vsub.s32 0, %v698_v18 }
 0x194   : > { %829 = vmatprep.mubr.bf16.mxu1 %v1963_v0  ;;  %1606 = vmatpush3.bf16.msra.mxu1 %v1731_v2  ;;  %v1589_v28 = vpop.f32.mrf.mxu0 }
 0x195   : > { %1599 = vmatprep.subr.bf16.mxu1 %v1732_v3  ;;  %v636_v43 = vadd.f32 %v1589_v28, %v1462_v39  ;;  %v2286_v23 = vrot.slane %v695_v21, %v703_v19  ;;  %v2288_v24 = vrot.slane %v695_v21, %v699_v20 }
 0x196   : > { %v627_v33 = vpop.f32.mrf.mxu0 }
 0x197   : > { %v628_v35 = vadd.f32 %v1458_v32, %v627_v33  ;;  %v674_v46 = vpack.c.bf16 %v636_v43, %v633_v42 }
 0x198   : > { %1607 = vmatpush3.bf16.msra.mxu1 %v1733_v4  ;;  %v1592_v37 = vpop.f32.mrf.mxu0 }
 0x199   : > { %1600 = vmatprep.subr.bf16.mxu1 %v1734_v5  ;;  %v673_v40 = vpack.c.bf16 %v628_v35, %v625_v34  ;;  %v649_v58 = vadd.f32 %v1592_v37, %v1469_v54  ;;  %v1485_v5 = vld [vmem:[%s2211_s8 + $0x38] sm:$0xff]  }
 0x19a   : > { %v640_v41 = vpop.f32.mrf.mxu0 }
 0x19b   : > { %830 = vmatmul.mubr.bf16.gmra.mxu1 %v672_v30  ;;  %v641_v50 = vadd.f32 %v1465_v47, %v640_v41 }
 0x19c   : > { %839 = vmatprep.mubr.bf16.mxu1 %v1963_v0  ;;  %1608 = vmatpush3.bf16.msra.mxu1 %v1735_v6  ;;  %v1593_v45 = vpop.f32.mrf.mxu0  ;;  %v1477_v6 = vunpack.c.l.bf16 %v1485_v5 }
 0x19d   : > { %1601 = vmatprep.subr.bf16.mxu1 %v1736_v7  ;;  %v652_v59 = vadd.f32 %v1593_v45, %v1470_v55  ;;  %v1478_v7 = vunpack.c.h.bf16 %v1485_v5 }
 0x19e   : > { %v643_v49 = vpop.f32.mrf.mxu0 }
 0x19f   : > { %v644_v51 = vadd.f32 %v1466_v48, %v643_v49  ;;  %v676_v62 = vpack.c.bf16 %v652_v59, %v649_v58 }
 0x1a0   : > { %1609 = vmatpush3.bf16.msra.mxu1 %v1737_v8  ;;  %v1596_v53 = vpop.f32.mrf.mxu0 }
 0x1a1   : > { %1602 = vmatprep.subr.bf16.mxu1 %v1738_v9  ;;  %v675_v56 = vpack.c.bf16 %v644_v51, %v641_v50  ;;  %v665_v9 = vadd.f32 %v1596_v53, %v1477_v6 }
 0x1a2   : > { %v656_v57 = vpop.f32.mrf.mxu0 }
 0x1a3   : > { %840 = vmatmul.mubr.bf16.gmra.mxu1 %v673_v40  ;;  %v657_v3 = vadd.f32 %v1473_v63, %v656_v57 }
 0x1a4   : > { %849 = vmatprep.mubr.bf16.mxu1 %v1963_v0  ;;  %1610 = vmatpush3.bf16.msra.mxu1 %v1739_v10  ;;  %v1597_v61 = vpop.f32.mrf.mxu0 }
 0x1a5   : > { %v668_v10 = vadd.f32 %v1597_v61, %v1478_v7  ;;  %1603 = vmatprep.subr.bf16.mxu1 %v1740_v12 }
 0x1a6   : > { %v659_v2 = vpop.f32.mrf.mxu0 }
 0x1a7   : > { %v660_v4 = vadd.f32 %v1474_v1, %v659_v2  ;;  %v678_v11 = vpack.c.bf16 %v668_v10, %v665_v9 }
 0x1a8   : > { %1611 = vmatpush3.bf16.msra.mxu1 %v1741_v13 }
 0x1a9   : > { %v677_v8 = vpack.c.bf16 %v660_v4, %v657_v3  ;;  %1604 = vmatprep.subr.bf16.mxu1 %v1742_v14 }
 0x1ab   : > { %850 = vmatmul.mubr.bf16.gmra.mxu1 %v674_v46 }
 0x1ac   : > { %859 = vmatprep.mubr.bf16.mxu1 %v1963_v0  ;;  %1612 = vmatpush3.bf16.msra.mxu1 %v1743_v15 }
 0x1b3   : > { %860 = vmatmul.mubr.bf16.gmra.mxu1 %v675_v56 }
 0x1b4   : > { %869 = vmatprep.mubr.bf16.mxu1 %v1963_v0 }
 0x1bb   : > { %870 = vmatmul.mubr.bf16.gmra.mxu1 %v676_v62 }
 0x1bc   : > { %879 = vmatprep.mubr.bf16.mxu1 %v1963_v0 }
 0x1c3   : > { %880 = vmatmul.mubr.bf16.gmra.mxu1 %v677_v8 }
 0x1c4   : > { %889 = vmatprep.mubr.bf16.mxu1 %v1963_v0  ;;  %v1744_v0 = vld [vmem:[%s2233_s14 + $0x40] sm:$0xff]  }
 0x1c5   : > { %1516 = vmatprep.subr.bf16.mxu0 %v1744_v0  ;;  %1605 = vmatprep.subr.bf16.mxu1 %v1744_v0 }
 0x1c6   : > { %1517 = vmatpush3.bf16.msra.mxu0 %v1745_v16  ;;  %1613 = vmatpush3.bf16.msra.mxu1 %v1745_v16 }
 0x1cb   : > { %890 = vmatmul.mubr.bf16.gmra.mxu1 %v678_v11 }
 0x253   : > { %v821_v22 = vpop.f32.mrf.mxu1 }
 0x254   : > { %v822_v29 = vadd.f32 %v821_v22, %v2288_v24 }
 0x255   : > { %v823_v25 = vpop.f32.mrf.mxu1 }
 0x256   : > { %v824_v27 = vadd.f32 %v823_v25, %v2286_v23  ;;  %v900_v36 = vmax.f32 %v822_v29, 0.0 }
 0x257   : > { %v825_v26 = vpop.f32.mrf.mxu1 }
 0x258   : > { %v826_v28 = vadd.f32 %v825_v26, %v2288_v24  ;;  %v901_v34 = vmax.f32 %v824_v27, 0.0 }
 0x259   : > { %v827_v30 = vpop.f32.mrf.mxu1 }
 0x25a   : > { %v828_v31 = vadd.f32 %v827_v30, %v2286_v23  ;;  %v902_v32 = vmax.f32 %v826_v28, 0.0 }
 0x25b   : > { %v831_v33 = vpop.f32.mrf.mxu1 }
 0x25c   : > { %v903_v35 = vmax.f32 %v828_v31, 0.0  ;;  %v932_v39 = vpack.c.bf16 %v902_v32, %v900_v36  ;;  %v832_v43 = vadd.f32 %v831_v33, %v2288_v24 }
 0x25d   : > { %v833_v37 = vpop.f32.mrf.mxu1 }
 0x25e   : > { %v933_v38 = vpack.c.bf16 %v903_v35, %v901_v34  ;;  %v834_v41 = vadd.f32 %v833_v37, %v2286_v23  ;;  %v904_v50 = vmax.f32 %v832_v43, 0.0 }
 0x25f   : > { %v835_v40 = vpop.f32.mrf.mxu1 }
 0x260   : > { %v836_v42 = vadd.f32 %v835_v40, %v2288_v24  ;;  %1115 = vmatprep.mubr.bf16.mxu0 %v933_v38  ;;  %v905_v48 = vmax.f32 %v834_v41, 0.0 }
 0x261   : > { %v837_v44 = vpop.f32.mrf.mxu1  ;;  %1116 = vmatmul.mubr.bf16.vlgmr.msra.gmra.mxu0 %v932_v39 }
 0x262   : > { %v838_v45 = vadd.f32 %v837_v44, %v2286_v23  ;;  %v906_v46 = vmax.f32 %v836_v42, 0.0 }
 0x263   : > { %v841_v47 = vpop.f32.mrf.mxu1 }
 0x264   : > { %v907_v49 = vmax.f32 %v838_v45, 0.0  ;;  %v934_v53 = vpack.c.bf16 %v906_v46, %v904_v50  ;;  %v842_v57 = vadd.f32 %v841_v47, %v2288_v24 }
 0x265   : > { %v843_v51 = vpop.f32.mrf.mxu1 }
 0x266   : > { %v935_v52 = vpack.c.bf16 %v907_v49, %v905_v48  ;;  %v844_v55 = vadd.f32 %v843_v51, %v2286_v23  ;;  %v908_v1 = vmax.f32 %v842_v57, 0.0 }
 0x267   : > { %v845_v54 = vpop.f32.mrf.mxu1 }
 0x268   : > { %v846_v56 = vadd.f32 %v845_v54, %v2288_v24  ;;  %1123 = vmatprep.mubr.bf16.mxu0 %v935_v52  ;;  %v909_v62 = vmax.f32 %v844_v55, 0.0 }
 0x269   : > { %v847_v58 = vpop.f32.mrf.mxu1  ;;  %1124 = vmatmul.mubr.bf16.gmra.mxu0 %v934_v53 }
 0x26a   : > { %v848_v59 = vadd.f32 %v847_v58, %v2286_v23  ;;  %v910_v60 = vmax.f32 %v846_v56, 0.0 }
 0x26b   : > { %v851_v61 = vpop.f32.mrf.mxu1 }
 0x26c   : > { %v911_v63 = vmax.f32 %v848_v59, 0.0  ;;  %v936_v4 = vpack.c.bf16 %v910_v60, %v908_v1  ;;  %v852_v8 = vadd.f32 %v851_v61, %v2288_v24 }
 0x26d   : > { %v853_v2 = vpop.f32.mrf.mxu1 }
 0x26e   : > { %v937_v3 = vpack.c.bf16 %v911_v63, %v909_v62  ;;  %v854_v6 = vadd.f32 %v853_v2, %v2286_v23  ;;  %v912_v15 = vmax.f32 %v852_v8, 0.0 }
 0x26f   : > { %v855_v5 = vpop.f32.mrf.mxu1 }
 0x270   : > { %v856_v7 = vadd.f32 %v855_v5, %v2288_v24  ;;  %1131 = vmatprep.mubr.bf16.mxu0 %v937_v3  ;;  %v913_v13 = vmax.f32 %v854_v6, 0.0 }
 0x271   : > { %v857_v9 = vpop.f32.mrf.mxu1  ;;  %1132 = vmatmul.mubr.bf16.gmra.mxu0 %v936_v4 }
 0x272   : > { %v858_v10 = vadd.f32 %v857_v9, %v2286_v23  ;;  %v914_v11 = vmax.f32 %v856_v7, 0.0 }
 0x273   : > { %v861_v12 = vpop.f32.mrf.mxu1 }
 0x274   : > { %v915_v14 = vmax.f32 %v858_v10, 0.0  ;;  %v938_v17 = vpack.c.bf16 %v914_v11, %v912_v15  ;;  %v862_v21 = vadd.f32 %v861_v12, %v2288_v24  ;;  %v2327_v12 = vld [vmem:[%s416_s29] ss:$0 sm:$0xff] }
 0x275   : > { %v863_v0 = vpop.f32.mrf.mxu1 }
 0x276   : > { %v939_v16 = vpack.c.bf16 %v915_v14, %v913_v13  ;;  %v864_v19 = vadd.f32 %v863_v0, %v2286_v23  ;;  %v916_v30 = vmax.f32 %v862_v21, 0.0 }
 0x277   : > { %v865_v18 = vpop.f32.mrf.mxu1 }
 0x278   : > { %v866_v20 = vadd.f32 %v865_v18, %v2288_v24  ;;  %1139 = vmatprep.mubr.bf16.mxu0 %v939_v16  ;;  %v917_v28 = vmax.f32 %v864_v19, 0.0 }
 0x279   : > { %v867_v22 = vpop.f32.mrf.mxu1  ;;  %1140 = vmatmul.mubr.bf16.gmra.mxu0 %v938_v17 }
 0x27a   : > { %v868_v25 = vadd.f32 %v867_v22, %v2286_v23  ;;  %v918_v26 = vmax.f32 %v866_v20, 0.0 }
 0x27b   : > { %v871_v27 = vpop.f32.mrf.mxu1 }
 0x27c   : > { %v919_v29 = vmax.f32 %v868_v25, 0.0  ;;  %v940_v33 = vpack.c.bf16 %v918_v26, %v916_v30  ;;  %v872_v37 = vadd.f32 %v871_v27, %v2288_v24 }
 0x27d   : > { %v873_v31 = vpop.f32.mrf.mxu1 }
 0x27e   : > { %v941_v32 = vpack.c.bf16 %v919_v29, %v917_v28  ;;  %v874_v35 = vadd.f32 %v873_v31, %v2286_v23  ;;  %v920_v44 = vmax.f32 %v872_v37, 0.0 }
 0x27f   : > { %v875_v34 = vpop.f32.mrf.mxu1 }
 0x280   : > { %v876_v36 = vadd.f32 %v875_v34, %v2288_v24  ;;  %1147 = vmatprep.mubr.bf16.mxu0 %v941_v32  ;;  %v921_v42 = vmax.f32 %v874_v35, 0.0 }
 0x281   : > { %v877_v38 = vpop.f32.mrf.mxu1  ;;  %1148 = vmatmul.mubr.bf16.gmra.mxu0 %v940_v33 }
 0x282   : > { %v878_v39 = vadd.f32 %v877_v38, %v2286_v23  ;;  %v922_v40 = vmax.f32 %v876_v36, 0.0 }
 0x283   : > { %v881_v41 = vpop.f32.mrf.mxu1 }
 0x284   : > { %v923_v43 = vmax.f32 %v878_v39, 0.0  ;;  %v942_v47 = vpack.c.bf16 %v922_v40, %v920_v44  ;;  %v882_v51 = vadd.f32 %v881_v41, %v2288_v24 }
 0x285   : > { %v883_v45 = vpop.f32.mrf.mxu1 }
 0x286   : > { %v943_v46 = vpack.c.bf16 %v923_v43, %v921_v42  ;;  %v884_v49 = vadd.f32 %v883_v45, %v2286_v23  ;;  %v924_v58 = vmax.f32 %v882_v51, 0.0 }
 0x287   : > { %v885_v48 = vpop.f32.mrf.mxu1 }
 0x288   : > { %v886_v50 = vadd.f32 %v885_v48, %v2288_v24  ;;  %1155 = vmatprep.mubr.bf16.mxu0 %v943_v46  ;;  %v925_v56 = vmax.f32 %v884_v49, 0.0 }
 0x289   : > { %v887_v52 = vpop.f32.mrf.mxu1  ;;  %1156 = vmatmul.mubr.bf16.gmra.mxu0 %v942_v47 }
 0x28a   : > { %v888_v53 = vadd.f32 %v887_v52, %v2286_v23  ;;  %v926_v54 = vmax.f32 %v886_v50, 0.0 }
 0x28b   : > { %v891_v55 = vpop.f32.mrf.mxu1 }
 0x28c   : > { %v927_v57 = vmax.f32 %v888_v53, 0.0  ;;  %v944_v61 = vpack.c.bf16 %v926_v54, %v924_v58  ;;  %v892_v2 = vadd.f32 %v891_v55, %v2288_v24 }
 0x28d   : > { %v893_v59 = vpop.f32.mrf.mxu1 }
 0x28e   : > { %v945_v60 = vpack.c.bf16 %v927_v57, %v925_v56  ;;  %v894_v63 = vadd.f32 %v893_v59, %v2286_v23  ;;  %v928_v8 = vmax.f32 %v892_v2, 0.0 }
 0x28f   : > { %v895_v62 = vpop.f32.mrf.mxu1 }
 0x290   : > { %v896_v1 = vadd.f32 %v895_v62, %v2288_v24  ;;  %1163 = vmatprep.mubr.bf16.mxu1 %v945_v60  ;;  %v929_v6 = vmax.f32 %v894_v63, 0.0 }
 0x291   : > { %v897_v3 = vpop.f32.mrf.mxu1  ;;  %1164 = vmatmul.mubr.bf16.vlgmr.msra.gmra.mxu1 %v944_v61 }
 0x292   : > { %v898_v4 = vadd.f32 %v897_v3, %v2286_v23  ;;  %v930_v5 = vmax.f32 %v896_v1, 0.0 }
 0x294   : > { %v931_v7 = vmax.f32 %v898_v4, 0.0  ;;  %v946_v10 = vpack.c.bf16 %v930_v5, %v928_v8 }
 0x296   : > { %v947_v9 = vpack.c.bf16 %v931_v7, %v929_v6 }
 0x298   : > { %1171 = vmatprep.mubr.bf16.mxu1 %v947_v9 }
 0x299   : > { %1172 = vmatmul.mubr.bf16.gmra.mxu1 %v946_v10 }
 0x321   : > { %v1518_v11 = vpop.f32.mrf.mxu0 }
 0x323   : > { %v1519_v24 = vpop.f32.mrf.mxu0 }
 0x324   : > { %v1520_v13 = vadd.f32 %v1519_v24, %v1518_v11 }
 0x325   : > { %v1521_v14 = vpop.f32.mrf.mxu0 }
 0x326   : > { %v2330_v23 = vadd.f32 %v1520_v13, %v2327_v12 }
 0x327   : > { %v1522_v15 = vpop.f32.mrf.mxu0 }
 0x328   : > { %v1523_v0 = vadd.f32 %v1522_v15, %v1521_v14 }
 0x329   : > { %v1524_v16 = vpop.f32.mrf.mxu0 }
 0x32a   : > { %v2333_v17 = vadd.f32 %v1523_v0, %v2327_v12 }
 0x32b   : > { %v1525_v18 = vpop.f32.mrf.mxu0 }
 0x32c   : > { %v1526_v19 = vadd.f32 %v1525_v18, %v1524_v16 }
 0x32d   : > { %v1527_v20 = vpop.f32.mrf.mxu0 }
 0x32e   : > { %v2336_v21 = vadd.f32 %v1526_v19, %v2327_v12 }
 0x32f   : > { %v1528_v22 = vpop.f32.mrf.mxu0 }
 0x330   : > { %v1529_v25 = vadd.f32 %v1528_v22, %v1527_v20 }
 0x331   : > { %v1530_v26 = vpop.f32.mrf.mxu0 }
 0x332   : > { %v2339_v27 = vadd.f32 %v1529_v25, %v2327_v12 }
 0x333   : > { %v1531_v28 = vpop.f32.mrf.mxu0 }
 0x334   : > { %v1532_v29 = vadd.f32 %v1531_v28, %v1530_v26 }
 0x335   : > { %v1533_v30 = vpop.f32.mrf.mxu0 }
 0x336   : > { %v2342_v31 = vadd.f32 %v1532_v29, %v2327_v12 }
 0x337   : > { %v1534_v32 = vpop.f32.mrf.mxu0 }
 0x338   : > { %v1535_v33 = vadd.f32 %v1534_v32, %v1533_v30 }
 0x339   : > { %v1536_v34 = vpop.f32.mrf.mxu0 }
 0x33a   : > { %v2345_v35 = vadd.f32 %v1535_v33, %v2327_v12 }
 0x33b   : > { %v1537_v36 = vpop.f32.mrf.mxu0 }
 0x33c   : > { %v1538_v37 = vadd.f32 %v1537_v36, %v1536_v34 }
 0x33d   : > { %v1539_v38 = vpop.f32.mrf.mxu0 }
 0x33e   : > { %v2348_v39 = vadd.f32 %v1538_v37, %v2327_v12 }
 0x33f   : > { %v1540_v40 = vpop.f32.mrf.mxu0 }
 0x340   : > { %v1541_v41 = vadd.f32 %v1540_v40, %v1539_v38 }
 0x341   : > { %v1542_v42 = vpop.f32.mrf.mxu0 }
 0x342   : > { %v2351_v43 = vadd.f32 %v1541_v41, %v2327_v12 }
 0x343   : > { %v1543_v44 = vpop.f32.mrf.mxu0 }
 0x344   : > { %v1544_v45 = vadd.f32 %v1543_v44, %v1542_v42 }
 0x345   : > { %v1545_v46 = vpop.f32.mrf.mxu0 }
 0x346   : > { %v2354_v47 = vadd.f32 %v1544_v45, %v2327_v12 }
 0x347   : > { %v1546_v48 = vpop.f32.mrf.mxu0 }
 0x348   : > { %v1547_v49 = vadd.f32 %v1546_v48, %v1545_v46 }
 0x349   : > { %v1548_v50 = vpop.f32.mrf.mxu0 }
 0x34a   : > { %v2357_v51 = vadd.f32 %v1547_v49, %v2327_v12 }
 0x34b   : > { %v1549_v52 = vpop.f32.mrf.mxu0 }
 0x34c   : > { %v1550_v53 = vadd.f32 %v1549_v52, %v1548_v50 }
 0x34d   : > { %v1551_v54 = vpop.f32.mrf.mxu0 }
 0x34e   : > { %v2360_v55 = vadd.f32 %v1550_v53, %v2327_v12 }
 0x34f   : > { %v1552_v56 = vpop.f32.mrf.mxu0 }
 0x350   : > { %v1553_v57 = vadd.f32 %v1552_v56, %v1551_v54 }
 0x351   : > { %v1554_v58 = vpop.f32.mrf.mxu1 }
 0x352   : > { %v2363_v59 = vadd.f32 %v1553_v57, %v2327_v12 }
 0x353   : > { %v1555_v60 = vpop.f32.mrf.mxu1 }
 0x354   : > { %v1556_v61 = vadd.f32 %v1555_v60, %v1554_v58 }
 0x355   : > { %v1557_v62 = vpop.f32.mrf.mxu1 }
 0x356   : > { %v1166_v63 = vadd.f32 %v1556_v61, %v2327_v12 }
 0x357   : > { %v1558_v1 = vpop.f32.mrf.mxu1 }
 0x358   : > { %v1559_v2 = vadd.f32 %v1558_v1, %v1557_v62 }
 0x359   : > { %v1560_v3 = vpop.f32.mrf.mxu1 }
 0x35a   : > { %v1169_v4 = vadd.f32 %v1559_v2, %v2327_v12 }
 0x35b   : > { %v1561_v5 = vpop.f32.mrf.mxu1 }
 0x35c   : > { %v1562_v6 = vadd.f32 %v1561_v5, %v1560_v3 }
 0x35d   : > { %v1563_v7 = vpop.f32.mrf.mxu1 }
 0x35e   : > { %v1174_v8 = vadd.f32 %v1562_v6, %v2327_v12  ;;  %1183 = sbr.rel (%p1438_p6) target bundleno = 877 (0x36d), region = 76 }
 0x35f   : > { %v1564_v9 = vpop.f32.mrf.mxu1 }
 0x360   : > { %v1565_v10 = vadd.f32 %v1564_v9, %v1563_v7 }
 0x362   : > { %v1177_v11 = vadd.f32 %v1565_v10, %v2327_v12 }
 0x363   : > { %v1184_v24 = vmax.f32 %v2330_v23, 0.0  ;;  %v1185_v13 = vmax.f32 %v2333_v17, 0.0  ;;  %v1186_v14 = vmax.f32 %v2336_v21, 0.0  ;;  %v1187_v15 = vmax.f32 %v2339_v27, 0.0 }
 0x364   : > { %v1188_v0 = vmax.f32 %v2342_v31, 0.0  ;;  %v1189_v16 = vmax.f32 %v2345_v35, 0.0  ;;  %v1190_v18 = vmax.f32 %v2348_v39, 0.0  ;;  %v1191_v12 = vmax.f32 %v2351_v43, 0.0 }
 0x365   : > { %1200 = vst [vmem:[#allocation10] sm:$0xff] %v1184_v24  ;;  %1201 = vst [vmem:[#allocation10 + $0x8] sm:$0xff] %v1185_v13  ;;  %v1192_v19 = vmax.f32 %v2354_v47, 0.0  ;;  %v1193_v20 = vmax.f32 %v2357_v51, 0.0  ;;  %v1194_v22 = vmax.f32 %v2360_v55, 0.0  ;;  %v1195_v25 = vmax.f32 %v2363_v59, 0.0 }
 0x366   : > { %1202 = vst [vmem:[#allocation10 + $0x10] sm:$0xff] %v1186_v14  ;;  %1203 = vst [vmem:[#allocation10 + $0x18] sm:$0xff] %v1187_v15  ;;  %v1196_v26 = vmax.f32 %v1166_v63, 0.0  ;;  %v1197_v28 = vmax.f32 %v1169_v4, 0.0  ;;  %v1198_v29 = vmax.f32 %v1174_v8, 0.0  ;;  %v1199_v30 = vmax.f32 %v1177_v11, 0.0 }
 0x367   : > { %1204 = vst [vmem:[#allocation10 + $0x20] sm:$0xff] %v1188_v0  ;;  %1205 = vst [vmem:[#allocation10 + $0x28] sm:$0xff] %v1189_v16 }
 0x368   : > { %1206 = vst [vmem:[#allocation10 + $0x30] sm:$0xff] %v1190_v18  ;;  %1207 = vst [vmem:[#allocation10 + $0x38] sm:$0xff] %v1191_v12 }
 0x369   : > { %1208 = vst [vmem:[#allocation10 + $0x40] sm:$0xff] %v1192_v19  ;;  %1209 = vst [vmem:[#allocation10 + $0x48] sm:$0xff] %v1193_v20 }
 0x36a   : > { %1210 = vst [vmem:[#allocation10 + $0x50] sm:$0xff] %v1194_v22  ;;  %1211 = vst [vmem:[#allocation10 + $0x58] sm:$0xff] %v1195_v25 }
 0x36b   : > { %1212 = vst [vmem:[#allocation10 + $0x60] sm:$0xff] %v1196_v26  ;;  %1213 = vst [vmem:[#allocation10 + $0x68] sm:$0xff] %v1197_v28 }
 0x36c   : > { %1214 = vst [vmem:[#allocation10 + $0x70] sm:$0xff] %v1198_v29  ;;  %1215 = vst [vmem:[#allocation10 + $0x78] sm:$0xff] %v1199_v30 }
 0x36d PF: > { %p1439_p7 = scmp.ne.s32.totalorder %s2026_s28, 1 }
 0x36f   : > { %1219 = sbr.rel (%p1439_p7) target bundleno = 892 (0x37c), region = 80 }
 0x374   : > { %1220 = vst [vmem:[#allocation10] sm:$0xff] %v2330_v23  ;;  %1221 = vst [vmem:[#allocation10 + $0x8] sm:$0xff] %v2333_v17 }
 0x375   : > { %1222 = vst [vmem:[#allocation10 + $0x10] sm:$0xff] %v2336_v21  ;;  %1223 = vst [vmem:[#allocation10 + $0x18] sm:$0xff] %v2339_v27 }
 0x376   : > { %1224 = vst [vmem:[#allocation10 + $0x20] sm:$0xff] %v2342_v31  ;;  %1225 = vst [vmem:[#allocation10 + $0x28] sm:$0xff] %v2345_v35 }
 0x377   : > { %1226 = vst [vmem:[#allocation10 + $0x30] sm:$0xff] %v2348_v39  ;;  %1227 = vst [vmem:[#allocation10 + $0x38] sm:$0xff] %v2351_v43 }
 0x378   : > { %1228 = vst [vmem:[#allocation10 + $0x40] sm:$0xff] %v2354_v47  ;;  %1229 = vst [vmem:[#allocation10 + $0x48] sm:$0xff] %v2357_v51 }
 0x379   : > { %1230 = vst [vmem:[#allocation10 + $0x50] sm:$0xff] %v2360_v55  ;;  %1231 = vst [vmem:[#allocation10 + $0x58] sm:$0xff] %v2363_v59 }
 0x37a   : > { %1232 = vst [vmem:[#allocation10 + $0x60] sm:$0xff] %v1166_v63  ;;  %1233 = vst [vmem:[#allocation10 + $0x68] sm:$0xff] %v1169_v4 }
 0x37b   : > { %1234 = vst [vmem:[#allocation10 + $0x70] sm:$0xff] %v1174_v8  ;;  %1235 = vst [vmem:[#allocation10 + $0x78] sm:$0xff] %v1177_v11 }
 0x37c PF: > { %s1964_s9 = smov [#allocation10]  }
 0x37d   : > { %s1242_s23 = sshll.u32 %s1964_s9, 4  ;;  %s1243_s23 = int_to_ptr.vmem [resolvable:$true] %s1242_s23 }
 0x37e   : > { %s1882_s17 = scalar_lea.vmem %s1243_s23, 2048  ;;  %p1889_p8 = scmp.lt.s32.totalorder %s1243_s23, %s1243_s23 }
 0x37f   : > { %p1883_p11 = scmp.ne.s32.totalorder %s1243_s23, %s1882_s17  ;;  %p1890_p5 = scmp.lt.s32.totalorder %s1882_s17, %s1882_s17 }
 0x381   : > { %p1884_p4 = pnand %p1883_p11, %p1438_p6  ;;  %p1891_p10 = por %p1890_p5, %p1889_p8 }
 0x383   : > { %p1885_p9 = pneg %p1884_p4 }
 0x385   : > { %p1892_p12 = pnand %p1891_p10, %p1885_p9 }
 0x387   : > { %1895 = shalt.err (!%p1892_p12)
}
 0x388   : > { %s1965_s16 = smov 128   ;;  %s1966_s20 = smov 8  }
 0x389   : > { %1629 = dma.vmem_to_hbm [thread:$0]  (%p1438_p6), %s1243_s23, 2048, %s2428_s7, [#allocation4], %s1965_s16, %s1965_s16, %s1966_s20  }
 0x38a   : > { %1935 = dma.done.wait (%p1438_p6), [#allocation4], 2048  }
 0x38b   : > { %1937 = vsyncadd (%p1438_p6), [#allocation4], 4294965248 }
 0x38c PF: > { %s2468_s27 = sld [smem:[#allocation15_spill]]  ;;  %s2470_s24 = smov %s1944_s25 }
 0x38d   : > { %s2469_s8 = sld [smem:[#allocation16_spill]]  ;;  %s2471_s25 = smov %s1948_s26 }
 0x392   : > { %p17_p13 = scmp.ge.s32.totalorder %s2468_s27, 4  }
 0x393   : > { %s2472_s26 = smov %s2469_s8 }
 0x394   :  { %19 = sbr.rel (!%p17_p13) target bundleno = 6 (0x6), region = 132 }
 0x399   :  { %1258 = vsyncpa [#allocation3], 1 }
 0x39a   :  { %1260 = vsyncpa [#allocation3 + $0x1], 1 }
 0x39b   :  { %1261 = vsyncpa [#allocation6], 1 }
 0x39c   :  { %1262 = vsyncpa [#allocation4], 1 }
 0x39d   :  { %1264 = vsyncpa [#allocation4 + $0x1], 1 }

// kernel: tpu_custom_call.1
= control target key start
LH: loop header
LB: loop body
LE: loop exit
PB: predicated region body
PF: predicated region fallthrough
CT: control target
= control target key end

     0   :  { %s2421_s0 = inlined_call_operand.hbm [shape: f32[128,128], index: 0, kind: input, shape index: {}]   ;;  %s2422_s1 = inlined_call_operand.hbm [shape: bf16[128,128], index: 1, kind: input, shape index: {}]   ;;  %s2423_s2 = inlined_call_operand.hbm [shape: bf16[2,128,128], index: 2, kind: input, shape index: {}]   ;;  %s2424_s3 = inlined_call_operand.hbm [shape: bf16[2,128,256], index: 3, kind: input, shape index: {}]   ;;  %s2425_s4 = inlined_call_operand.vmem [shape: f32[2,1,256], index: 4, kind: input, shape index: {}]   ;;  %s2426_s5 = inlined_call_operand.hbm [shape: bf16[2,256,128], index: 5, kind: input, shape index: {}]   ;;  %s2427_s6 = inlined_call_operand.vmem [shape: f32[2,1,128], index: 6, kind: input, shape index: {}]   ;;  %s2428_s7 = inlined_call_operand.hbm [shape: f32[128,128], index: 7, kind: output, shape index: {}]  }
   0x1   :  { %2444 = sst [smem:[#allocation17_spill]] %s2421_s0 }
   0x2   :  { %12 = vsyncpa [#allocation3], 0 }
   0x3   :  { %13 = vsyncpa [#allocation6], 0 }
   0x4   :  { %14 = vsyncpa [#allocation4], 0  ;;  %s2007_s24 = smov 0   ;;  %s2009_s25 = smov 0  }
   0x5   :  { %s2011_s26 = smov 0   ;;  %s2013_s27 = smov 0  }
   0x6 LB: > { %s2026_s28 = sadd.s32 4294967295, %s1952_s27   ;;  %s2029_s29 = sadd.s32 1, %s1952_s27   ;;  %s1952_s27 = sphi %s2013_s27, %s2468_s27   ;;  %s1948_s26 = sphi %s2011_s26, %s2472_s26   ;;  %s1944_s25 = sphi %s2009_s25, %s2471_s25   ;;  %s1940_s24 = sphi %s2007_s24, %s2470_s24  }
   0x7   : > { %2445 = sst [smem:[#allocation15_spill]] %s2029_s29  ;;  %s66_s30 = ssub.s32 %s1952_s27, %s2029_s29 }
   0x8   : > { %s69_s8 = sadd.s32 1, %s1948_s26  ;;  %p67_p0 = scmp.eq.s32.totalorder %s66_s30, 0 }
   0x9   : > { %p76_p1 = scmp.ne.s32.totalorder %s1948_s26, %s1944_s25  ;;  %p77_p2 = scmp.eq.s32.totalorder %s1952_s27, 0 }
   0xa   : > { %p82_p3 = scmp.ne.s32.totalorder %s1944_s25, %s1940_s24  ;;  %p2429_p5 = scmp.eq.s32.totalorder %s2026_s28, 0 }
   0xb   : > { %s2039_s9 = scalar_select %p67_p0, %s1948_s26, %s69_s8  }
   0xc   : > { %p2041_p4 = por %p77_p2, %p76_p1  ;;  %p1376_p6 = scmp.ge.s32.totalorder %s1952_s27, 1 }
   0xd   : > { %2446 = sst [smem:[#allocation16_spill]] %s2039_s9  ;;  %p218_p7 = scmp.lt.s32.totalorder %s1952_s27, 3 }
   0xe   : > { %p2050_p8 = por %p2429_p5, %p82_p3  ;;  %s1954_s13 = smov [#allocation2]  }
   0xf   : > { %p2055_p10 = pnand %p1376_p6, %p218_p7  ;;  %s230_s14 = sshll.u32 %s1954_s13, 4  ;;  %s231_s14 = int_to_ptr.vmem [resolvable:$true] %s230_s14 }
  0x10   : > { %s2448_s11 = scalar_select %p2050_p8, 1, 0 }
  0x11   : > { %s2449_s12 = scalar_select %p2055_p10, 1, 0 }
  0x12   : > { %p1632_p11 = pneg %p2055_p10  ;;  %p1651_p13 = scmp.lt.s32.totalorder %s1952_s27, 2 }
  0x13   : > { %s1757_s17 = scalar_lea.vmem %s231_s14, 2048  ;;  %p1765_p7 = scmp.lt.s32.totalorder %s231_s14, %s231_s14 }
  0x14   : > { %p2063_p12 = pnand %p1632_p11, %p2429_p5  ;;  %p2070_p0 = pnand %p1651_p13, %p2041_p4 }
  0x15   : > { %p1758_p2 = scmp.ne.s32.totalorder %s231_s14, %s1757_s17  ;;  %p1766_p11 = scmp.lt.s32.totalorder %s1757_s17, %s1757_s17 }
  0x16   : > { %s2450_s15 = scalar_select %p2063_p12, 1, 0 }
  0x17   : > { %p2432_p1 = pneg %p2063_p12  ;;  %p1767_p9 = por %p1766_p11, %p1765_p7 }
  0x19   : > { %p1760_p3 = pnand %p1758_p2, %p2432_p1 }
  0x1b   : > { %p1761_p6 = pneg %p1760_p3 }
  0x1d   : > { %p1768_p5 = pnand %p1767_p9, %p1761_p6 }
  0x1f   : > { %1771 = shalt.err (!%p1768_p5)
}
  0x20   : > { %s2437_s18 = smov 128   ;;  %s2438_s19 = smov 8  }
  0x21   : > { %s2452_s0 = sld [smem:[#allocation17_spill]]  ;;  %s257_s22 = sand.u32 1, %s1952_s27  }
  0x22   : > { %s259_s23 = sand.u32 1, %s1948_s26   ;;  %s1444_s30 = sshll.u32 %s1952_s27, 10 }
  0x23   : > { %s1380_s24 = sshll.u32 %s259_s23, 6  ;;  %s2093_s13 = scalar_lea.hbm %s2423_s2, %s1444_s30 }
  0x24   : > { %s261_s17 = scalar_lea.vmem [#allocation7], %s1380_s24  ;;  %s2095_s29 = sshll.u32 %s259_s23, 7 }
  0x25   : > { %s268_s9 = sshll.u32 %s261_s17, 4  ;;  %s2099_s20 = scalar_lea.sflag [#allocation3], %s257_s22  ;;  %s2097_s9 = int_to_ptr.vmem [resolvable:$true] %s268_s9 }
  0x26   : > { %p2105_p5 = pneg %p2070_p0  ;;  %s1777_s23 = scalar_lea.hbm %s2423_s2, 2048 }
  0x27   : > { %1635 = dma.hbm_to_vmem [thread:$0]  (!%p2063_p12), %s2452_s0, 2048, %s231_s14, [#allocation3], %s2437_s18, %s2437_s18, %s2438_s19  }
  0x28   : > { %s1772_s14 = scalar_lea.hbm %s2093_s13, 1024  ;;  %p1778_p2 = scmp.lt.s32.totalorder %s2093_s13, %s2423_s2 }
  0x29   : > { %p1773_p4 = scmp.ne.s32.totalorder %s2093_s13, %s1772_s14  ;;  %p1779_p3 = scmp.lt.s32.totalorder %s1777_s23, %s1772_s14 }
  0x2b   : > { %p1775_p9 = pnand %p2105_p5, %p1773_p4  ;;  %p1780_p6 = por %p1779_p3, %p1778_p2 }
  0x2d   : > { %p1776_p13 = pneg %p1775_p9 }
  0x2f   : > { %p1781_p7 = pnand %p1780_p6, %p1776_p13 }
  0x31   : > { %1784 = shalt.err (!%p1781_p7)
}
  0x32   : > { %s1785_s22 = scalar_lea.vmem %s2097_s9, 1024  ;;  %s1957_s17 = smov [#allocation7]  }
  0x33   : > { %p1786_p11 = scmp.ne.s32.totalorder %s2097_s9, %s1785_s22  ;;  %s1790_s30 = sshll.u32 %s1957_s17, 4  ;;  %s1791_s30 = int_to_ptr.vmem [resolvable:$false] %s1790_s30 }
  0x34   : > { %s1792_s24 = scalar_lea.vmem %s1791_s30, 2048  ;;  %p1793_p1 = scmp.lt.s32.totalorder %s2097_s9, %s1791_s30 }
  0x35   : > { %p1788_p4 = pnand %p1786_p11, %p2105_p5  ;;  %p1794_p8 = scmp.lt.s32.totalorder %s1792_s24, %s1785_s22 }
  0x37   : > { %p1789_p9 = pneg %p1788_p4  ;;  %p1795_p10 = por %p1794_p8, %p1793_p1 }
  0x39   : > { %p1796_p12 = pnand %p1795_p10, %p1789_p9 }
  0x3b   : > { %1799 = shalt.err (!%p1796_p12)
}
  0x3c   : > { %s2439_s14 = smov 64   ;;  %s2441_s23 = smov 4  }
  0x3d   : > { %1642 = dma.hbm_to_vmem [thread:$0]  (!%p2070_p0), %s2093_s13, 1024, %s2097_s9, %s2099_s20, %s2439_s14, %s2439_s14, %s2441_s23  }
  0x3e   : > { %s2443_s8 = sshll.u32 %s1952_s27, 11  ;;  %s282_s10 = scalar_lea.vmem [#allocation8], %s2095_s29 }
  0x3f   : > { %s289_s22 = sshll.u32 %s282_s10, 4  ;;  %s2138_s24 = scalar_lea.hbm %s2424_s3, %s2443_s8  ;;  %s290_s22 = int_to_ptr.vmem [resolvable:$true] %s289_s22 }
  0x40   : > { %s1800_s18 = scalar_lea.hbm %s2138_s24, 2048  ;;  %s1805_s13 = scalar_lea.hbm %s2424_s3, 4096 }
  0x41   : > { %p1801_p8 = scmp.ne.s32.totalorder %s2138_s24, %s1800_s18  ;;  %p1806_p1 = scmp.lt.s32.totalorder %s2138_s24, %s2424_s3 }
  0x42   : > { %p1807_p13 = scmp.lt.s32.totalorder %s1805_s13, %s1800_s18 }
  0x43   : > { %p1803_p10 = pnand %p1801_p8, %p2105_p5 }
  0x44   : > { %p1808_p2 = por %p1807_p13, %p1806_p1 }
  0x45   : > { %p1804_p12 = pneg %p1803_p10 }
  0x47   : > { %p1809_p3 = pnand %p1808_p2, %p1804_p12 }
  0x49   : > { %1812 = shalt.err (!%p1809_p3)
}
  0x4a   : > { %s1813_s17 = scalar_lea.vmem %s290_s22, 2048  ;;  %s1960_s30 = smov [#allocation8]  }
  0x4b   : > { %p1814_p6 = scmp.ne.s32.totalorder %s290_s22, %s1813_s17  ;;  %s1818_s23 = sshll.u32 %s1960_s30, 4  ;;  %s1819_s23 = int_to_ptr.vmem [resolvable:$false] %s1818_s23 }
  0x4c   : > { %s1820_s8 = scalar_lea.vmem %s1819_s23, 4096  ;;  %p1821_p4 = scmp.lt.s32.totalorder %s290_s22, %s1819_s23 }
  0x4d   : > { %p1816_p7 = pnand %p1814_p6, %p2105_p5  ;;  %p1822_p9 = scmp.lt.s32.totalorder %s1820_s8, %s1813_s17 }
  0x4f   : > { %p1817_p11 = pneg %p1816_p7  ;;  %p1823_p8 = por %p1822_p9, %p1821_p4 }
  0x51   : > { %p1824_p10 = pnand %p1823_p8, %p1817_p11 }
  0x53   : > { %1827 = shalt.err (!%p1824_p10)
}
  0x54   : > { %s2454_s18 = smov 8   ;;  %s2455_s19 = smov 128  }
  0x55   : > { %1645 = dma.hbm_to_vmem [thread:$0]  (!%p2070_p0), %s2138_s24, 2048, %s290_s22, %s2099_s20, %s2455_s19, %s2455_s19, %s2454_s18  }
  0x56   : > { %s1961_s14 = smov [#allocation5]   ;;  %s2456_s13 = sshll.u32 %s1952_s27, 11 }
  0x57   : > { %s243_s9 = sshll.u32 %s1961_s14, 4  ;;  %s2165_s8 = scalar_lea.hbm %s2426_s5, %s2456_s13  ;;  %s244_s9 = int_to_ptr.vmem [resolvable:$true] %s243_s9 }
  0x58   : > { %s310_s17 = scalar_lea.vmem [#allocation9], %s2095_s29  ;;  %s1839_s0 = scalar_lea.vmem %s244_s9, 1024 }
  0x59   : > { %s317_s30 = sshll.u32 %s310_s17, 4  ;;  %p1840_p12 = scmp.ne.s32.totalorder %s244_s9, %s1839_s0  ;;  %s318_s30 = int_to_ptr.vmem [resolvable:$true] %s317_s30 }
  0x5a   : > { %p2457_p1 = scmp.ne.s32.totalorder %s2450_s15, 0  ;;  %p1847_p6 = scmp.lt.s32.totalorder %s244_s9, %s244_s9 }
  0x5b   : > { %p1848_p7 = scmp.lt.s32.totalorder %s1839_s0, %s1839_s0 }
  0x5c   : > { %p2458_p13 = pneg %p2457_p1 }
  0x5d   : > { %p1849_p11 = por %p1848_p7, %p1847_p6 }
  0x5e   : > { %p1842_p2 = pnand %p1840_p12, %p2458_p13 }
  0x60   : > { %p1843_p3 = pneg %p1842_p2 }
  0x62   : > { %p1850_p4 = pnand %p1849_p11, %p1843_p3 }
  0x64   : > { %1853 = shalt.err (!%p1850_p4)
}
  0x65   : > { %s2459_s27 = smov 4   ;;  %s2460_s22 = smov 64  }
  0x66   : > { %1638 = dma.hbm_to_vmem [thread:$0]  (!%p2457_p1), %s2422_s1, 1024, %s244_s9, [#allocation6], %s2460_s22, %s2460_s22, %s2459_s27  }
  0x67   : > { %s1854_s29 = scalar_lea.hbm %s2165_s8, 2048  ;;  %s1859_s15 = scalar_lea.hbm %s2426_s5, 4096 }
  0x68   : > { %p1855_p9 = scmp.ne.s32.totalorder %s2165_s8, %s1854_s29  ;;  %p1860_p12 = scmp.lt.s32.totalorder %s2165_s8, %s2426_s5 }
  0x69   : > { %p1861_p13 = scmp.lt.s32.totalorder %s1859_s15, %s1854_s29 }
  0x6a   : > { %p1857_p8 = pnand %p1855_p9, %p2105_p5 }
  0x6b   : > { %p1862_p2 = por %p1861_p13, %p1860_p12 }
  0x6c   : > { %p1858_p10 = pneg %p1857_p8 }
  0x6e   : > { %p1863_p3 = pnand %p1862_p2, %p1858_p10 }
  0x70   : > { %1866 = shalt.err (!%p1863_p3)
}
  0x71   : > { %s1867_s10 = scalar_lea.vmem %s318_s30, 2048  ;;  %s1962_s9 = smov [#allocation9]  }
  0x72   : > { %p1868_p1 = scmp.ne.s32.totalorder %s318_s30, %s1867_s10  ;;  %s1872_s23 = sshll.u32 %s1962_s9, 4  ;;  %s1873_s23 = int_to_ptr.vmem [resolvable:$false] %s1872_s23 }
  0x73   : > { %s1874_s17 = scalar_lea.vmem %s1873_s23, 4096  ;;  %p1875_p11 = scmp.lt.s32.totalorder %s318_s30, %s1873_s23 }
  0x74   : > { %p1870_p6 = pnand %p1868_p1, %p2105_p5  ;;  %p1876_p4 = scmp.lt.s32.totalorder %s1874_s17, %s1867_s10 }
  0x76   : > { %p1871_p7 = pneg %p1870_p6  ;;  %p1877_p9 = por %p1876_p4, %p1875_p11 }
  0x78   : > { %p1878_p8 = pnand %p1877_p9, %p1871_p7 }
  0x7a   : > { %1881 = shalt.err (!%p1878_p8)
}
  0x7b   : > { %1648 = dma.hbm_to_vmem [thread:$0]  (!%p2070_p0), %s2165_s8, 2048, %s318_s30, %s2099_s20, %s2460_s22, %s2460_s22, %s2459_s27  }
  0x7c   : > { %p2461_p5 = scmp.ne.s32.totalorder %s2449_s12, 0 }
  0x7d   : > { %p2462_p10 = scmp.eq.s32.totalorder (!%p2461_p5), %s2026_s28, 0 }
  0x7e   : > { %335 = sbr.rel (%p2461_p5) target bundleno = 908 (0x38c), region = 48 }
  0x83   : > { %1923 = dma.done.wait (%p2462_p10), [#allocation3], 2048   ;;  %p2463_p12 = pmov %p2462_p10 }
  0x84   : > { %p2464_p13 = pmov %p2462_p10 }
  0x85   : > { %1925 = vsyncadd (%p2463_p12), [#allocation3], 4294965248 }
  0x86   : > { %1927 = dma.done.wait (%p2464_p13), [#allocation6], 1024   ;;  %p2465_p2 = pmov %p2462_p10 }
  0x87   : > { %s345_s16 = sand.u32 1, %s2026_s28   ;;  %s347_s20 = sand.u32 1, %s1944_s25  }
  0x88   : > { %1929 = vsyncadd (%p2465_p2), [#allocation6], 4294966272  ;;  %s1392_s21 = sshll.u32 %s347_s20, 6  ;;  %s346_s12 = scalar_lea.sflag [#allocation3], %s345_s16 }
  0x89   : > { %s2211_s8 = scalar_lea.vmem [#allocation7], %s1392_s21  ;;  %p2466_p0 = scmp.ne.s32.totalorder %s2448_s11, 0 }
  0x8b   : > { %1931 = dma.done.wait (%p2466_p0), %s346_s12, 5120  }
  0x8c   : > { %1933 = vsyncadd (%p2466_p0), %s346_s12, 4294962176  ;;  %s1393_s30 = sshll.u32 %s347_s20, 7  ;;  %p410_p3 = scmp.lt.s32.totalorder %s2026_s28, 1 }
  0x8d   : > { %s2231_s11 = scalar_lea.vmem [#allocation8], %s1393_s30  ;;  %s2233_s14 = scalar_lea.vmem [#allocation9], %s1393_s30 }
  0x8e   : > { %s2219_s27 = scalar_select %p410_p3, %s2026_s28, 1 }
  0x8f   : > { %p2467_p1 = scmp.ne.s32.totalorder %s2026_s28, 0 }
  0x90   : > { %s1395_s22 = sshll.u32 %s2219_s27, 1  ;;  %s416_s29 = scalar_lea.vmem %s2427_s6, %s2219_s27 }
  0x91   : > { %s2229_s15 = scalar_lea.vmem %s2425_s4, %s1395_s22  ;;  %421 = sbr.rel (%p2467_p1) target bundleno = 159 (0x9f), region = 72 }
  0x96   : > { %v422_v0 = vld [vmem:[#allocation2] sm:$0xff]  ;;  %v423_v1 = vld [vmem:[#allocation2 + $0x8] sm:$0xff]  ;;  %v424_v2 = vld [vmem:[#allocation2 + $0x10] sm:$0xff] }
  0x97   : > { %438 = vst [vmem:[#allocation10] sm:$0xff] %v422_v0  ;;  %439 = vst [vmem:[#allocation10 + $0x8] sm:$0xff] %v423_v1  ;;  %v425_v3 = vld [vmem:[#allocation2 + $0x18] sm:$0xff]  ;;  %v426_v4 = vld [vmem:[#allocation2 + $0x20] sm:$0xff] }
  0x98   : > { %440 = vst [vmem:[#allocation10 + $0x10] sm:$0xff] %v424_v2  ;;  %v427_v5 = vld [vmem:[#allocation2 + $0x28] sm:$0xff]  ;;  %441 = vst [vmem:[#allocation10 + $0x18] sm:$0xff] %v425_v3  ;;  %v428_v6 = vld [vmem:[#allocation2 + $0x30] sm:$0xff] }
  0x99   : > { %442 = vst [vmem:[#allocation10 + $0x20] sm:$0xff] %v426_v4  ;;  %443 = vst [vmem:[#allocation10 + $0x28] sm:$0xff] %v427_v5  ;;  %v429_v7 = vld [vmem:[#allocation2 + $0x38] sm:$0xff]  ;;  %v430_v8 = vld [vmem:[#allocation2 + $0x40] sm:$0xff] }
  0x9a   : > { %444 = vst [vmem:[#allocation10 + $0x30] sm:$0xff] %v428_v6  ;;  %445 = vst [vmem:[#allocation10 + $0x38] sm:$0xff] %v429_v7  ;;  %v431_v9 = vld [vmem:[#allocation2 + $0x48] sm:$0xff]  ;;  %v432_v10 = vld [vmem:[#allocation2 + $0x50] sm:$0xff] }
  0x9b   : > { %446 = vst [vmem:[#allocation10 + $0x40] sm:$0xff] %v430_v8  ;;  %v433_v11 = vld [vmem:[#allocation2 + $0x58] sm:$0xff]  ;;  %447 = vst [vmem:[#allocation10 + $0x48] sm:$0xff] %v431_v9  ;;  %v434_v12 = vld [vmem:[#allocation2 + $0x60] sm:$0xff] }
  0x9c   : > { %448 = vst [vmem:[#allocation10 + $0x50] sm:$0xff] %v432_v10  ;;  %449 = vst [vmem:[#allocation10 + $0x58] sm:$0xff] %v433_v11  ;;  %v435_v13 = vld [vmem:[#allocation2 + $0x68] sm:$0xff]  ;;  %v436_v14 = vld [vmem:[#allocation2 + $0x70] sm:$0xff] }
  0x9d   : > { %450 = vst [vmem:[#allocation10 + $0x60] sm:$0xff] %v434_v12  ;;  %451 = vst [vmem:[#allocation10 + $0x68] sm:$0xff] %v435_v13  ;;  %v437_v15 = vld [vmem:[#allocation2 + $0x78] sm:$0xff] }
  0x9e   : > { %452 = vst [vmem:[#allocation10 + $0x70] sm:$0xff] %v436_v14  ;;  %453 = vst [vmem:[#allocation10 + $0x78] sm:$0xff] %v437_v15 }
  0x9f PF: > { %v1698_v27 = vld [vmem:[#allocation5] sm:$0xff]   ;;  %v1706_v34 = vld [vmem:[%s2231_s11 + $0x74] ss:$8 sps:$4 sm:$0xff]   ;;  %v1708_v35 = vld [vmem:[%s2231_s11 + $0x70] ss:$8 sps:$4 sm:$0xff]   ;;  %v1963_v0 = vmov 0  }
  0xa0   : > { %1582 = vmatprep.mubr.bf16.mxu0 %v1698_v27  ;;  %v458_v31 = vld [vmem:[#allocation10 + $0x20] sm:$0xff]  ;;  %v459_v33 = vld [vmem:[#allocation10 + $0x28] sm:$0xff]  ;;  %v456_v37 = vld [vmem:[#allocation10 + $0x10] sm:$0xff]  ;;  %787 = vmatprep.subr.bf16.mxu1 %v1706_v34  ;;  %p1438_p6 = scmp.eq.s32.totalorder %s2026_s28, 1 }
  0xa1   : > { %v460_v29 = vld [vmem:[#allocation10 + $0x30] sm:$0xff]  ;;  %v461_v30 = vld [vmem:[#allocation10 + $0x38] sm:$0xff]  ;;  %v1709_v36 = vld [vmem:[%s2231_s11 + $0x64] ss:$8 sps:$4 sm:$0xff]   ;;  %v488_v38 = vpack.c.bf16 %v459_v33, %v458_v31  ;;  %788 = vmatpush1.bf16.msra.mxu1 %v1708_v35  ;;  %819 = vmatprep.mubr.bf16.mxu1 %v1963_v0 }
  0xa2   : > { %v462_v24 = vld [vmem:[#allocation10 + $0x40] sm:$0xff]  ;;  %v463_v26 = vld [vmem:[#allocation10 + $0x48] sm:$0xff]  ;;  %v489_v32 = vpack.c.bf16 %v461_v30, %v460_v29  ;;  %v457_v40 = vld [vmem:[#allocation10 + $0x18] sm:$0xff]  ;;  %789 = vmatprep.subr.bf16.mxu1 %v1709_v36 }
  0xa3   : > { %v464_v22 = vld [vmem:[#allocation10 + $0x50] sm:$0xff]  ;;  %v465_v23 = vld [vmem:[#allocation10 + $0x58] sm:$0xff]  ;;  %v490_v28 = vpack.c.bf16 %v463_v26, %v462_v24  ;;  %v1711_v39 = vld [vmem:[%s2231_s11 + $0x60] ss:$8 sps:$4 sm:$0xff]   ;;  %v487_v45 = vpack.c.bf16 %v457_v40, %v456_v37 }
  0xa4   : > { %v466_v18 = vld [vmem:[#allocation10 + $0x60] sm:$0xff]  ;;  %v467_v20 = vld [vmem:[#allocation10 + $0x68] sm:$0xff]  ;;  %v491_v25 = vpack.c.bf16 %v465_v23, %v464_v22  ;;  %v1712_v41 = vld [vmem:[%s2231_s11 + $0x54] ss:$8 sps:$4 sm:$0xff]  }
  0xa5   : > { %v468_v16 = vld [vmem:[#allocation10 + $0x70] sm:$0xff]  ;;  %v469_v17 = vld [vmem:[#allocation10 + $0x78] sm:$0xff]  ;;  %v492_v21 = vpack.c.bf16 %v467_v20, %v466_v18  ;;  %v454_v42 = vld [vmem:[#allocation10] sm:$0xff]  ;;  %790 = vmatpush1.bf16.msra.mxu1 %v1711_v39 }
  0xa6   : > { %v493_v19 = vpack.c.bf16 %v469_v17, %v468_v16  ;;  %v455_v43 = vld [vmem:[#allocation10 + $0x8] sm:$0xff]  ;;  %v1714_v44 = vld [vmem:[%s2231_s11 + $0x50] ss:$8 sps:$4 sm:$0xff]   ;;  %791 = vmatprep.subr.bf16.mxu1 %v1712_v41  ;;  %v1718_v48 = vld [vmem:[%s2231_s11 + $0x34] ss:$8 sps:$4 sm:$0xff]  }
  0xa7   : > { %v1715_v46 = vld [vmem:[%s2231_s11 + $0x44] ss:$8 sps:$4 sm:$0xff]   ;;  %v1717_v47 = vld [vmem:[%s2231_s11 + $0x40] ss:$8 sps:$4 sm:$0xff]   ;;  %v486_v49 = vpack.c.bf16 %v455_v43, %v454_v42  ;;  %v1720_v50 = vld [vmem:[%s2231_s11 + $0x30] ss:$8 sps:$4 sm:$0xff]  }
  0xa8   : > { %1566 = vmatprep.subr.bf16.mxu0 %v493_v19  ;;  %v1721_v51 = vld [vmem:[%s2231_s11 + $0x24] ss:$8 sps:$4 sm:$0xff]   ;;  %v1700_v53 = vld [vmem:[#allocation5 + $0x10] sm:$0xff]   ;;  %v1701_v54 = vld [vmem:[#allocation5 + $0x18] sm:$0xff]  }
  0xa9   : > { %1567 = vmatpush3.bf16.msra.mxu0 %v493_v19  ;;  %792 = vmatpush1.bf16.msra.mxu1 %v1714_v44  ;;  %v1699_v52 = vld [vmem:[#allocation5 + $0x8] sm:$0xff]   ;;  %v1702_v55 = vld [vmem:[#allocation5 + $0x20] sm:$0xff]   ;;  %v1704_v57 = vld [vmem:[#allocation5 + $0x30] sm:$0xff]  }
  0xaa   : > { %1568 = vmatprep.subr.bf16.mxu0 %v492_v21  ;;  %793 = vmatprep.subr.bf16.mxu1 %v1715_v46  ;;  %v1703_v56 = vld [vmem:[#allocation5 + $0x28] sm:$0xff]   ;;  %v1705_v58 = vld [vmem:[#allocation5 + $0x38] sm:$0xff]   ;;  %v1732_v3 = vld [vmem:[%s2233_s14 + $0x70] sm:$0xff]  }
  0xab   : > { %v1723_v59 = vld [vmem:[%s2231_s11 + $0x20] ss:$8 sps:$4 sm:$0xff]   ;;  %v1724_v60 = vld [vmem:[%s2231_s11 + $0x14] ss:$8 sps:$4 sm:$0xff]   ;;  %v1726_v61 = vld [vmem:[%s2231_s11 + $0x10] ss:$8 sps:$4 sm:$0xff]  }
  0xac   : > { %v1727_v62 = vld [vmem:[%s2231_s11 + $0x4] ss:$8 sps:$4 sm:$0xff]   ;;  %v1729_v63 = vld [vmem:[%s2231_s11] ss:$8 sps:$4 sm:$0xff]   ;;  %v1730_v1 = vld [vmem:[%s2233_s14 + $0x78] sm:$0xff]  }
  0xad   : > { %1569 = vmatpush3.bf16.msra.mxu0 %v492_v21  ;;  %794 = vmatpush1.bf16.msra.mxu1 %v1717_v47  ;;  %v1731_v2 = vld [vmem:[%s2233_s14 + $0x38] sm:$0xff]   ;;  %v1733_v4 = vld [vmem:[%s2233_s14 + $0x30] sm:$0xff]   ;;  %v1734_v5 = vld [vmem:[%s2233_s14 + $0x68] sm:$0xff]  }
  0xae   : > { %1570 = vmatprep.subr.bf16.mxu0 %v491_v25  ;;  %795 = vmatprep.subr.bf16.mxu1 %v1718_v48  ;;  %v1735_v6 = vld [vmem:[%s2233_s14 + $0x28] sm:$0xff]   ;;  %v1736_v7 = vld [vmem:[%s2233_s14 + $0x60] sm:$0xff]   ;;  %v1738_v9 = vld [vmem:[%s2233_s14 + $0x58] sm:$0xff]  }
  0xaf   : > { %v1737_v8 = vld [vmem:[%s2233_s14 + $0x20] sm:$0xff]   ;;  %v1739_v10 = vld [vmem:[%s2233_s14 + $0x18] sm:$0xff]   ;;  %v1479_v20 = vld [vmem:[%s2211_s8 + $0x8] sm:$0xff]  }
  0xb0   : > { %v1448_v12 = vld [vmem:[%s2211_s8] sm:$0xff]   ;;  %v1454_v22 = vunpack.c.h.bf16 %v1479_v20  ;;  %v1480_v27 = vld [vmem:[%s2211_s8 + $0x10] sm:$0xff]   ;;  %v1481_v36 = vld [vmem:[%s2211_s8 + $0x18] sm:$0xff]  }
  0xb1   : > { %1571 = vmatpush3.bf16.msra.mxu0 %v491_v25  ;;  %796 = vmatpush1.bf16.msra.mxu1 %v1720_v50  ;;  %v1449_v14 = vunpack.c.l.bf16 %v1448_v12  ;;  %v1450_v15 = vunpack.c.h.bf16 %v1448_v12  ;;  %v1453_v25 = vunpack.c.l.bf16 %v1479_v20  ;;  %v1457_v31 = vunpack.c.l.bf16 %v1480_v27  ;;  %v1482_v44 = vld [vmem:[%s2211_s8 + $0x20] sm:$0xff]   ;;  %v1740_v12 = vld [vmem:[%s2233_s14 + $0x50] sm:$0xff]  }
  0xb2   : > { %1572 = vmatprep.subr.bf16.mxu0 %v490_v28  ;;  %797 = vmatprep.subr.bf16.mxu1 %v1721_v51  ;;  %v1462_v39 = vunpack.c.h.bf16 %v1481_v36  ;;  %v1465_v47 = vunpack.c.l.bf16 %v1482_v44  ;;  %v1466_v48 = vunpack.c.h.bf16 %v1482_v44 }
  0xb5   : > { %1573 = vmatpush3.bf16.msra.mxu0 %v490_v28  ;;  %798 = vmatpush1.bf16.msra.mxu1 %v1723_v59 }
  0xb6   : > { %1574 = vmatprep.subr.bf16.mxu0 %v489_v32  ;;  %799 = vmatprep.subr.bf16.mxu1 %v1724_v60  ;;  %v1484_v60 = vld [vmem:[%s2211_s8 + $0x30] sm:$0xff]  }
  0xb9   : > { %1575 = vmatpush3.bf16.msra.mxu0 %v489_v32  ;;  %800 = vmatpush1.bf16.msra.mxu1 %v1726_v61  ;;  %v1458_v32 = vunpack.c.h.bf16 %v1480_v27 }
  0xba   : > { %1576 = vmatprep.subr.bf16.mxu0 %v488_v38  ;;  %801 = vmatprep.subr.bf16.mxu1 %v1727_v62 }
  0xbd   : > { %1577 = vmatpush3.bf16.msra.mxu0 %v488_v38  ;;  %802 = vmatpush1.bf16.msra.mxu1 %v1729_v63  ;;  %v1461_v38 = vunpack.c.l.bf16 %v1481_v36  ;;  %v1473_v63 = vunpack.c.l.bf16 %v1484_v60 }
  0xbe   : > { %1578 = vmatprep.subr.bf16.mxu0 %v487_v45  ;;  %1598 = vmatprep.subr.bf16.mxu1 %v1730_v1 }
  0xc1   : > { %1579 = vmatpush3.bf16.msra.mxu0 %v487_v45 }
  0xc2   : > { %1580 = vmatprep.subr.bf16.mxu0 %v486_v49 }
  0xc5   : > { %1581 = vmatpush3.bf16.msra.mxu0 %v486_v49 }
  0xc6   : > { %1502 = vmatprep.subr.bf16.mxu0 %v1730_v1  ;;  %v1474_v1 = vunpack.c.h.bf16 %v1484_v60 }
  0xc8   : > { %1583 = vmatmul.mubr.bf16.vlgmr.msra.gmra.mxu0 %v1699_v52  ;;  %v1483_v52 = vld [vmem:[%s2211_s8 + $0x28] sm:$0xff]  }
  0xc9   : > { %1586 = vmatprep.mubr.bf16.mxu0 %v1700_v53  ;;  %1503 = vmatpush3.bf16.msra.mxu0 %v1731_v2 }
  0xca   : > { %1504 = vmatprep.subr.bf16.mxu0 %v1732_v3 }
  0xcd   : > { %1505 = vmatpush3.bf16.msra.mxu0 %v1733_v4 }
  0xce   : > { %1506 = vmatprep.subr.bf16.mxu0 %v1734_v5 }
  0xd0   : > { %1587 = vmatmul.mubr.bf16.gmra.mxu0 %v1701_v54  ;;  %v1469_v54 = vunpack.c.l.bf16 %v1483_v52 }
  0xd1   : > { %1590 = vmatprep.mubr.bf16.mxu0 %v1702_v55  ;;  %1507 = vmatpush3.bf16.msra.mxu0 %v1735_v6  ;;  %v1470_v55 = vunpack.c.h.bf16 %v1483_v52 }
  0xd2   : > { %1508 = vmatprep.subr.bf16.mxu0 %v1736_v7 }
  0xd5   : > { %1509 = vmatpush3.bf16.msra.mxu0 %v1737_v8 }
  0xd6   : > { %1510 = vmatprep.subr.bf16.mxu0 %v1738_v9 }
  0xd8   : > { %1591 = vmatmul.mubr.bf16.gmra.mxu0 %v1703_v56 }
  0xd9   : > { %1594 = vmatprep.mubr.bf16.mxu0 %v1704_v57  ;;  %1511 = vmatpush3.bf16.msra.mxu0 %v1739_v10 }
  0xda   : > { %1512 = vmatprep.subr.bf16.mxu0 %v1740_v12 }
  0xe0   : > { %1595 = vmatmul.mubr.bf16.gmra.mxu0 %v1705_v58 }
 0x188   : > { %v1584_v11 = vpop.f32.mrf.mxu0 }
 0x189   : > { %v617_v29 = vadd.f32 %v1584_v11, %v1453_v25 }
 0x18a   : > { %v608_v13 = vpop.f32.mrf.mxu0 }
 0x18b   : > { %v609_v18 = vadd.f32 %v1449_v14, %v608_v13  ;;  %v1741_v13 = vld [vmem:[%s2233_s14 + $0x10] sm:$0xff]   ;;  %v1742_v14 = vld [vmem:[%s2233_s14 + $0x48] sm:$0xff]  }
 0x18c   : > { %v1585_v16 = vpop.f32.mrf.mxu0  ;;  %1513 = vmatpush3.bf16.msra.mxu0 %v1741_v13 }
 0x18d   : > { %v620_v26 = vadd.f32 %v1585_v16, %v1454_v22  ;;  %1514 = vmatprep.subr.bf16.mxu0 %v1742_v14  ;;  %v1745_v16 = vld [vmem:[%s2233_s14] sm:$0xff]  }
 0x18e   : > { %v611_v17 = vpop.f32.mrf.mxu0 }
 0x18f   : > { %v612_v19 = vadd.f32 %v1450_v15, %v611_v17  ;;  %v672_v30 = vpack.c.bf16 %v620_v26, %v617_v29  ;;  %v1743_v15 = vld [vmem:[%s2233_s14 + $0x8] sm:$0xff]   ;;  %v697_v17 = vlaneseq }
 0x190   : > { %v1588_v21 = vpop.f32.mrf.mxu0  ;;  %1515 = vmatpush3.bf16.msra.mxu0 %v1743_v15 }
 0x191   : > { %v671_v23 = vpack.c.bf16 %v612_v19, %v609_v18  ;;  %v633_v42 = vadd.f32 %v1588_v21, %v1461_v38  ;;  %v698_v18 = vshrl.u32 %v697_v17, 7  ;;  %v695_v21 = vld [vmem:[%s2229_s15] sm:$0x3] }
 0x192   : > { %v624_v24 = vpop.f32.mrf.mxu0 }
 0x193   : > { %820 = vmatmul.mubr.bf16.vlgmr.msra.gmra.mxu1 %v671_v23  ;;  %v625_v34 = vadd.f32 %v1457_v31, %v624_v24  ;;  %v703_v19 = vsub.s32 1, %v698_v18  ;;  %v699_v20 = vsub.s32 0, %v698_v18 }
 0x194   : > { %829 = vmatprep.mubr.bf16.mxu1 %v1963_v0  ;;  %1606 = vmatpush3.bf16.msra.mxu1 %v1731_v2  ;;  %v1589_v28 = vpop.f32.mrf.mxu0 }
 0x195   : > { %1599 = vmatprep.subr.bf16.mxu1 %v1732_v3  ;;  %v636_v43 = vadd.f32 %v1589_v28, %v1462_v39  ;;  %v2286_v23 = vrot.slane %v695_v21, %v703_v19  ;;  %v2288_v24 = vrot.slane %v695_v21, %v699_v20 }
 0x196   : > { %v627_v33 = vpop.f32.mrf.mxu0 }
 0x197   : > { %v628_v35 = vadd.f32 %v1458_v32, %v627_v33  ;;  %v674_v46 = vpack.c.bf16 %v636_v43, %v633_v42 }
 0x198   : > { %1607 = vmatpush3.bf16.msra.mxu1 %v1733_v4  ;;  %v1592_v37 = vpop.f32.mrf.mxu0 }
 0x199   : > { %1600 = vmatprep.subr.bf16.mxu1 %v1734_v5  ;;  %v673_v40 = vpack.c.bf16 %v628_v35, %v625_v34  ;;  %v649_v58 = vadd.f32 %v1592_v37, %v1469_v54  ;;  %v1485_v5 = vld [vmem:[%s2211_s8 + $0x38] sm:$0xff]  }
 0x19a   : > { %v640_v41 = vpop.f32.mrf.mxu0 }
 0x19b   : > { %830 = vmatmul.mubr.bf16.gmra.mxu1 %v672_v30  ;;  %v641_v50 = vadd.f32 %v1465_v47, %v640_v41 }
 0x19c   : > { %839 = vmatprep.mubr.bf16.mxu1 %v1963_v0  ;;  %1608 = vmatpush3.bf16.msra.mxu1 %v1735_v6  ;;  %v1593_v45 = vpop.f32.mrf.mxu0  ;;  %v1477_v6 = vunpack.c.l.bf16 %v1485_v5 }
 0x19d   : > { %1601 = vmatprep.subr.bf16.mxu1 %v1736_v7  ;;  %v652_v59 = vadd.f32 %v1593_v45, %v1470_v55  ;;  %v1478_v7 = vunpack.c.h.bf16 %v1485_v5 }
 0x19e   : > { %v643_v49 = vpop.f32.mrf.mxu0 }
 0x19f   : > { %v644_v51 = vadd.f32 %v1466_v48, %v643_v49  ;;  %v676_v62 = vpack.c.bf16 %v652_v59, %v649_v58 }
 0x1a0   : > { %1609 = vmatpush3.bf16.msra.mxu1 %v1737_v8  ;;  %v1596_v53 = vpop.f32.mrf.mxu0 }
 0x1a1   : > { %1602 = vmatprep.subr.bf16.mxu1 %v1738_v9  ;;  %v675_v56 = vpack.c.bf16 %v644_v51, %v641_v50  ;;  %v665_v9 = vadd.f32 %v1596_v53, %v1477_v6 }
 0x1a2   : > { %v656_v57 = vpop.f32.mrf.mxu0 }
 0x1a3   : > { %840 = vmatmul.mubr.bf16.gmra.mxu1 %v673_v40  ;;  %v657_v3 = vadd.f32 %v1473_v63, %v656_v57 }
 0x1a4   : > { %849 = vmatprep.mubr.bf16.mxu1 %v1963_v0  ;;  %1610 = vmatpush3.bf16.msra.mxu1 %v1739_v10  ;;  %v1597_v61 = vpop.f32.mrf.mxu0 }
 0x1a5   : > { %v668_v10 = vadd.f32 %v1597_v61, %v1478_v7  ;;  %1603 = vmatprep.subr.bf16.mxu1 %v1740_v12 }
 0x1a6   : > { %v659_v2 = vpop.f32.mrf.mxu0 }
 0x1a7   : > { %v660_v4 = vadd.f32 %v1474_v1, %v659_v2  ;;  %v678_v11 = vpack.c.bf16 %v668_v10, %v665_v9 }
 0x1a8   : > { %1611 = vmatpush3.bf16.msra.mxu1 %v1741_v13 }
 0x1a9   : > { %v677_v8 = vpack.c.bf16 %v660_v4, %v657_v3  ;;  %1604 = vmatprep.subr.bf16.mxu1 %v1742_v14 }
 0x1ab   : > { %850 = vmatmul.mubr.bf16.gmra.mxu1 %v674_v46 }
 0x1ac   : > { %859 = vmatprep.mubr.bf16.mxu1 %v1963_v0  ;;  %1612 = vmatpush3.bf16.msra.mxu1 %v1743_v15 }
 0x1b3   : > { %860 = vmatmul.mubr.bf16.gmra.mxu1 %v675_v56 }
 0x1b4   : > { %869 = vmatprep.mubr.bf16.mxu1 %v1963_v0 }
 0x1bb   : > { %870 = vmatmul.mubr.bf16.gmra.mxu1 %v676_v62 }
 0x1bc   : > { %879 = vmatprep.mubr.bf16.mxu1 %v1963_v0 }
 0x1c3   : > { %880 = vmatmul.mubr.bf16.gmra.mxu1 %v677_v8 }
 0x1c4   : > { %889 = vmatprep.mubr.bf16.mxu1 %v1963_v0  ;;  %v1744_v0 = vld [vmem:[%s2233_s14 + $0x40] sm:$0xff]  }
 0x1c5   : > { %1516 = vmatprep.subr.bf16.mxu0 %v1744_v0  ;;  %1605 = vmatprep.subr.bf16.mxu1 %v1744_v0 }
 0x1c6   : > { %1517 = vmatpush3.bf16.msra.mxu0 %v1745_v16  ;;  %1613 = vmatpush3.bf16.msra.mxu1 %v1745_v16 }
 0x1cb   : > { %890 = vmatmul.mubr.bf16.gmra.mxu1 %v678_v11 }
 0x253   : > { %v821_v22 = vpop.f32.mrf.mxu1 }
 0x254   : > { %v822_v29 = vadd.f32 %v821_v22, %v2288_v24 }
 0x255   : > { %v823_v25 = vpop.f32.mrf.mxu1 }
 0x256   : > { %v824_v27 = vadd.f32 %v823_v25, %v2286_v23  ;;  %v900_v36 = vmax.f32 %v822_v29, 0.0 }
 0x257   : > { %v825_v26 = vpop.f32.mrf.mxu1 }
 0x258   : > { %v826_v28 = vadd.f32 %v825_v26, %v2288_v24  ;;  %v901_v34 = vmax.f32 %v824_v27, 0.0 }
 0x259   : > { %v827_v30 = vpop.f32.mrf.mxu1 }
 0x25a   : > { %v828_v31 = vadd.f32 %v827_v30, %v2286_v23  ;;  %v902_v32 = vmax.f32 %v826_v28, 0.0 }
 0x25b   : > { %v831_v33 = vpop.f32.mrf.mxu1 }
 0x25c   : > { %v903_v35 = vmax.f32 %v828_v31, 0.0  ;;  %v932_v39 = vpack.c.bf16 %v902_v32, %v900_v36  ;;  %v832_v43 = vadd.f32 %v831_v33, %v2288_v24 }
 0x25d   : > { %v833_v37 = vpop.f32.mrf.mxu1 }
 0x25e   : > { %v933_v38 = vpack.c.bf16 %v903_v35, %v901_v34  ;;  %v834_v41 = vadd.f32 %v833_v37, %v2286_v23  ;;  %v904_v50 = vmax.f32 %v832_v43, 0.0 }
 0x25f   : > { %v835_v40 = vpop.f32.mrf.mxu1 }
 0x260   : > { %v836_v42 = vadd.f32 %v835_v40, %v2288_v24  ;;  %1115 = vmatprep.mubr.bf16.mxu0 %v933_v38  ;;  %v905_v48 = vmax.f32 %v834_v41, 0.0 }
 0x261   : > { %v837_v44 = vpop.f32.mrf.mxu1  ;;  %1116 = vmatmul.mubr.bf16.vlgmr.msra.gmra.mxu0 %v932_v39 }
 0x262   : > { %v838_v45 = vadd.f32 %v837_v44, %v2286_v23  ;;  %v906_v46 = vmax.f32 %v836_v42, 0.0 }
 0x263   : > { %v841_v47 = vpop.f32.mrf.mxu1 }
 0x264   : > { %v907_v49 = vmax.f32 %v838_v45, 0.0  ;;  %v934_v53 = vpack.c.bf16 %v906_v46, %v904_v50  ;;  %v842_v57 = vadd.f32 %v841_v47, %v2288_v24 }
 0x265   : > { %v843_v51 = vpop.f32.mrf.mxu1 }
 0x266   : > { %v935_v52 = vpack.c.bf16 %v907_v49, %v905_v48  ;;  %v844_v55 = vadd.f32 %v843_v51, %v2286_v23  ;;  %v908_v1 = vmax.f32 %v842_v57, 0.0 }
 0x267   : > { %v845_v54 = vpop.f32.mrf.mxu1 }
 0x268   : > { %v846_v56 = vadd.f32 %v845_v54, %v2288_v24  ;;  %1123 = vmatprep.mubr.bf16.mxu0 %v935_v52  ;;  %v909_v62 = vmax.f32 %v844_v55, 0.0 }
 0x269   : > { %v847_v58 = vpop.f32.mrf.mxu1  ;;  %1124 = vmatmul.mubr.bf16.gmra.mxu0 %v934_v53 }
 0x26a   : > { %v848_v59 = vadd.f32 %v847_v58, %v2286_v23  ;;  %v910_v60 = vmax.f32 %v846_v56, 0.0 }
 0x26b   : > { %v851_v61 = vpop.f32.mrf.mxu1 }
 0x26c   : > { %v911_v63 = vmax.f32 %v848_v59, 0.0  ;;  %v936_v4 = vpack.c.bf16 %v910_v60, %v908_v1  ;;  %v852_v8 = vadd.f32 %v851_v61, %v2288_v24 }
 0x26d   : > { %v853_v2 = vpop.f32.mrf.mxu1 }
 0x26e   : > { %v937_v3 = vpack.c.bf16 %v911_v63, %v909_v62  ;;  %v854_v6 = vadd.f32 %v853_v2, %v2286_v23  ;;  %v912_v15 = vmax.f32 %v852_v8, 0.0 }
 0x26f   : > { %v855_v5 = vpop.f32.mrf.mxu1 }
 0x270   : > { %v856_v7 = vadd.f32 %v855_v5, %v2288_v24  ;;  %1131 = vmatprep.mubr.bf16.mxu0 %v937_v3  ;;  %v913_v13 = vmax.f32 %v854_v6, 0.0 }
 0x271   : > { %v857_v9 = vpop.f32.mrf.mxu1  ;;  %1132 = vmatmul.mubr.bf16.gmra.mxu0 %v936_v4 }
 0x272   : > { %v858_v10 = vadd.f32 %v857_v9, %v2286_v23  ;;  %v914_v11 = vmax.f32 %v856_v7, 0.0 }
 0x273   : > { %v861_v12 = vpop.f32.mrf.mxu1 }
 0x274   : > { %v915_v14 = vmax.f32 %v858_v10, 0.0  ;;  %v938_v17 = vpack.c.bf16 %v914_v11, %v912_v15  ;;  %v862_v21 = vadd.f32 %v861_v12, %v2288_v24  ;;  %v2327_v12 = vld [vmem:[%s416_s29] ss:$0 sm:$0xff] }
 0x275   : > { %v863_v0 = vpop.f32.mrf.mxu1 }
 0x276   : > { %v939_v16 = vpack.c.bf16 %v915_v14, %v913_v13  ;;  %v864_v19 = vadd.f32 %v863_v0, %v2286_v23  ;;  %v916_v30 = vmax.f32 %v862_v21, 0.0 }
 0x277   : > { %v865_v18 = vpop.f32.mrf.mxu1 }
 0x278   : > { %v866_v20 = vadd.f32 %v865_v18, %v2288_v24  ;;  %1139 = vmatprep.mubr.bf16.mxu0 %v939_v16  ;;  %v917_v28 = vmax.f32 %v864_v19, 0.0 }
 0x279   : > { %v867_v22 = vpop.f32.mrf.mxu1  ;;  %1140 = vmatmul.mubr.bf16.gmra.mxu0 %v938_v17 }
 0x27a   : > { %v868_v25 = vadd.f32 %v867_v22, %v2286_v23  ;;  %v918_v26 = vmax.f32 %v866_v20, 0.0 }
 0x27b   : > { %v871_v27 = vpop.f32.mrf.mxu1 }
 0x27c   : > { %v919_v29 = vmax.f32 %v868_v25, 0.0  ;;  %v940_v33 = vpack.c.bf16 %v918_v26, %v916_v30  ;;  %v872_v37 = vadd.f32 %v871_v27, %v2288_v24 }
 0x27d   : > { %v873_v31 = vpop.f32.mrf.mxu1 }
 0x27e   : > { %v941_v32 = vpack.c.bf16 %v919_v29, %v917_v28  ;;  %v874_v35 = vadd.f32 %v873_v31, %v2286_v23  ;;  %v920_v44 = vmax.f32 %v872_v37, 0.0 }
 0x27f   : > { %v875_v34 = vpop.f32.mrf.mxu1 }
 0x280   : > { %v876_v36 = vadd.f32 %v875_v34, %v2288_v24  ;;  %1147 = vmatprep.mubr.bf16.mxu0 %v941_v32  ;;  %v921_v42 = vmax.f32 %v874_v35, 0.0 }
 0x281   : > { %v877_v38 = vpop.f32.mrf.mxu1  ;;  %1148 = vmatmul.mubr.bf16.gmra.mxu0 %v940_v33 }
 0x282   : > { %v878_v39 = vadd.f32 %v877_v38, %v2286_v23  ;;  %v922_v40 = vmax.f32 %v876_v36, 0.0 }
 0x283   : > { %v881_v41 = vpop.f32.mrf.mxu1 }
 0x284   : > { %v923_v43 = vmax.f32 %v878_v39, 0.0  ;;  %v942_v47 = vpack.c.bf16 %v922_v40, %v920_v44  ;;  %v882_v51 = vadd.f32 %v881_v41, %v2288_v24 }
 0x285   : > { %v883_v45 = vpop.f32.mrf.mxu1 }
 0x286   : > { %v943_v46 = vpack.c.bf16 %v923_v43, %v921_v42  ;;  %v884_v49 = vadd.f32 %v883_v45, %v2286_v23  ;;  %v924_v58 = vmax.f32 %v882_v51, 0.0 }
 0x287   : > { %v885_v48 = vpop.f32.mrf.mxu1 }
 0x288   : > { %v886_v50 = vadd.f32 %v885_v48, %v2288_v24  ;;  %1155 = vmatprep.mubr.bf16.mxu0 %v943_v46  ;;  %v925_v56 = vmax.f32 %v884_v49, 0.0 }
 0x289   : > { %v887_v52 = vpop.f32.mrf.mxu1  ;;  %1156 = vmatmul.mubr.bf16.gmra.mxu0 %v942_v47 }
 0x28a   : > { %v888_v53 = vadd.f32 %v887_v52, %v2286_v23  ;;  %v926_v54 = vmax.f32 %v886_v50, 0.0 }
 0x28b   : > { %v891_v55 = vpop.f32.mrf.mxu1 }
 0x28c   : > { %v927_v57 = vmax.f32 %v888_v53, 0.0  ;;  %v944_v61 = vpack.c.bf16 %v926_v54, %v924_v58  ;;  %v892_v2 = vadd.f32 %v891_v55, %v2288_v24 }
 0x28d   : > { %v893_v59 = vpop.f32.mrf.mxu1 }
 0x28e   : > { %v945_v60 = vpack.c.bf16 %v927_v57, %v925_v56  ;;  %v894_v63 = vadd.f32 %v893_v59, %v2286_v23  ;;  %v928_v8 = vmax.f32 %v892_v2, 0.0 }
 0x28f   : > { %v895_v62 = vpop.f32.mrf.mxu1 }
 0x290   : > { %v896_v1 = vadd.f32 %v895_v62, %v2288_v24  ;;  %1163 = vmatprep.mubr.bf16.mxu1 %v945_v60  ;;  %v929_v6 = vmax.f32 %v894_v63, 0.0 }
 0x291   : > { %v897_v3 = vpop.f32.mrf.mxu1  ;;  %1164 = vmatmul.mubr.bf16.vlgmr.msra.gmra.mxu1 %v944_v61 }
 0x292   : > { %v898_v4 = vadd.f32 %v897_v3, %v2286_v23  ;;  %v930_v5 = vmax.f32 %v896_v1, 0.0 }
 0x294   : > { %v931_v7 = vmax.f32 %v898_v4, 0.0  ;;  %v946_v10 = vpack.c.bf16 %v930_v5, %v928_v8 }
 0x296   : > { %v947_v9 = vpack.c.bf16 %v931_v7, %v929_v6 }
 0x298   : > { %1171 = vmatprep.mubr.bf16.mxu1 %v947_v9 }
 0x299   : > { %1172 = vmatmul.mubr.bf16.gmra.mxu1 %v946_v10 }
 0x321   : > { %v1518_v11 = vpop.f32.mrf.mxu0 }
 0x323   : > { %v1519_v24 = vpop.f32.mrf.mxu0 }
 0x324   : > { %v1520_v13 = vadd.f32 %v1519_v24, %v1518_v11 }
 0x325   : > { %v1521_v14 = vpop.f32.mrf.mxu0 }
 0x326   : > { %v2330_v23 = vadd.f32 %v1520_v13, %v2327_v12 }
 0x327   : > { %v1522_v15 = vpop.f32.mrf.mxu0 }
 0x328   : > { %v1523_v0 = vadd.f32 %v1522_v15, %v1521_v14 }
 0x329   : > { %v1524_v16 = vpop.f32.mrf.mxu0 }
 0x32a   : > { %v2333_v17 = vadd.f32 %v1523_v0, %v2327_v12 }
 0x32b   : > { %v1525_v18 = vpop.f32.mrf.mxu0 }
 0x32c   : > { %v1526_v19 = vadd.f32 %v1525_v18, %v1524_v16 }
 0x32d   : > { %v1527_v20 = vpop.f32.mrf.mxu0 }
 0x32e   : > { %v2336_v21 = vadd.f32 %v1526_v19, %v2327_v12 }
 0x32f   : > { %v1528_v22 = vpop.f32.mrf.mxu0 }
 0x330   : > { %v1529_v25 = vadd.f32 %v1528_v22, %v1527_v20 }
 0x331   : > { %v1530_v26 = vpop.f32.mrf.mxu0 }
 0x332   : > { %v2339_v27 = vadd.f32 %v1529_v25, %v2327_v12 }
 0x333   : > { %v1531_v28 = vpop.f32.mrf.mxu0 }
 0x334   : > { %v1532_v29 = vadd.f32 %v1531_v28, %v1530_v26 }
 0x335   : > { %v1533_v30 = vpop.f32.mrf.mxu0 }
 0x336   : > { %v2342_v31 = vadd.f32 %v1532_v29, %v2327_v12 }
 0x337   : > { %v1534_v32 = vpop.f32.mrf.mxu0 }
 0x338   : > { %v1535_v33 = vadd.f32 %v1534_v32, %v1533_v30 }
 0x339   : > { %v1536_v34 = vpop.f32.mrf.mxu0 }
 0x33a   : > { %v2345_v35 = vadd.f32 %v1535_v33, %v2327_v12 }
 0x33b   : > { %v1537_v36 = vpop.f32.mrf.mxu0 }
 0x33c   : > { %v1538_v37 = vadd.f32 %v1537_v36, %v1536_v34 }
 0x33d   : > { %v1539_v38 = vpop.f32.mrf.mxu0 }
 0x33e   : > { %v2348_v39 = vadd.f32 %v1538_v37, %v2327_v12 }
 0x33f   : > { %v1540_v40 = vpop.f32.mrf.mxu0 }
 0x340   : > { %v1541_v41 = vadd.f32 %v1540_v40, %v1539_v38 }
 0x341   : > { %v1542_v42 = vpop.f32.mrf.mxu0 }
 0x342   : > { %v2351_v43 = vadd.f32 %v1541_v41, %v2327_v12 }
 0x343   : > { %v1543_v44 = vpop.f32.mrf.mxu0 }
 0x344   : > { %v1544_v45 = vadd.f32 %v1543_v44, %v1542_v42 }
 0x345   : > { %v1545_v46 = vpop.f32.mrf.mxu0 }
 0x346   : > { %v2354_v47 = vadd.f32 %v1544_v45, %v2327_v12 }
 0x347   : > { %v1546_v48 = vpop.f32.mrf.mxu0 }
 0x348   : > { %v1547_v49 = vadd.f32 %v1546_v48, %v1545_v46 }
 0x349   : > { %v1548_v50 = vpop.f32.mrf.mxu0 }
 0x34a   : > { %v2357_v51 = vadd.f32 %v1547_v49, %v2327_v12 }
 0x34b   : > { %v1549_v52 = vpop.f32.mrf.mxu0 }
 0x34c   : > { %v1550_v53 = vadd.f32 %v1549_v52, %v1548_v50 }
 0x34d   : > { %v1551_v54 = vpop.f32.mrf.mxu0 }
 0x34e   : > { %v2360_v55 = vadd.f32 %v1550_v53, %v2327_v12 }
 0x34f   : > { %v1552_v56 = vpop.f32.mrf.mxu0 }
 0x350   : > { %v1553_v57 = vadd.f32 %v1552_v56, %v1551_v54 }
 0x351   : > { %v1554_v58 = vpop.f32.mrf.mxu1 }
 0x352   : > { %v2363_v59 = vadd.f32 %v1553_v57, %v2327_v12 }
 0x353   : > { %v1555_v60 = vpop.f32.mrf.mxu1 }
 0x354   : > { %v1556_v61 = vadd.f32 %v1555_v60, %v1554_v58 }
 0x355   : > { %v1557_v62 = vpop.f32.mrf.mxu1 }
 0x356   : > { %v1166_v63 = vadd.f32 %v1556_v61, %v2327_v12 }
 0x357   : > { %v1558_v1 = vpop.f32.mrf.mxu1 }
 0x358   : > { %v1559_v2 = vadd.f32 %v1558_v1, %v1557_v62 }
 0x359   : > { %v1560_v3 = vpop.f32.mrf.mxu1 }
 0x35a   : > { %v1169_v4 = vadd.f32 %v1559_v2, %v2327_v12 }
 0x35b   : > { %v1561_v5 = vpop.f32.mrf.mxu1 }
 0x35c   : > { %v1562_v6 = vadd.f32 %v1561_v5, %v1560_v3 }
 0x35d   : > { %v1563_v7 = vpop.f32.mrf.mxu1 }
 0x35e   : > { %v1174_v8 = vadd.f32 %v1562_v6, %v2327_v12  ;;  %1183 = sbr.rel (%p1438_p6) target bundleno = 877 (0x36d), region = 76 }
 0x35f   : > { %v1564_v9 = vpop.f32.mrf.mxu1 }
 0x360   : > { %v1565_v10 = vadd.f32 %v1564_v9, %v1563_v7 }
 0x362   : > { %v1177_v11 = vadd.f32 %v1565_v10, %v2327_v12 }
 0x363   : > { %v1184_v24 = vmax.f32 %v2330_v23, 0.0  ;;  %v1185_v13 = vmax.f32 %v2333_v17, 0.0  ;;  %v1186_v14 = vmax.f32 %v2336_v21, 0.0  ;;  %v1187_v15 = vmax.f32 %v2339_v27, 0.0 }
 0x364   : > { %v1188_v0 = vmax.f32 %v2342_v31, 0.0  ;;  %v1189_v16 = vmax.f32 %v2345_v35, 0.0  ;;  %v1190_v18 = vmax.f32 %v2348_v39, 0.0  ;;  %v1191_v12 = vmax.f32 %v2351_v43, 0.0 }
 0x365   : > { %1200 = vst [vmem:[#allocation10] sm:$0xff] %v1184_v24  ;;  %1201 = vst [vmem:[#allocation10 + $0x8] sm:$0xff] %v1185_v13  ;;  %v1192_v19 = vmax.f32 %v2354_v47, 0.0  ;;  %v1193_v20 = vmax.f32 %v2357_v51, 0.0  ;;  %v1194_v22 = vmax.f32 %v2360_v55, 0.0  ;;  %v1195_v25 = vmax.f32 %v2363_v59, 0.0 }
 0x366   : > { %1202 = vst [vmem:[#allocation10 + $0x10] sm:$0xff] %v1186_v14  ;;  %1203 = vst [vmem:[#allocation10 + $0x18] sm:$0xff] %v1187_v15  ;;  %v1196_v26 = vmax.f32 %v1166_v63, 0.0  ;;  %v1197_v28 = vmax.f32 %v1169_v4, 0.0  ;;  %v1198_v29 = vmax.f32 %v1174_v8, 0.0  ;;  %v1199_v30 = vmax.f32 %v1177_v11, 0.0 }
 0x367   : > { %1204 = vst [vmem:[#allocation10 + $0x20] sm:$0xff] %v1188_v0  ;;  %1205 = vst [vmem:[#allocation10 + $0x28] sm:$0xff] %v1189_v16 }
 0x368   : > { %1206 = vst [vmem:[#allocation10 + $0x30] sm:$0xff] %v1190_v18  ;;  %1207 = vst [vmem:[#allocation10 + $0x38] sm:$0xff] %v1191_v12 }
 0x369   : > { %1208 = vst [vmem:[#allocation10 + $0x40] sm:$0xff] %v1192_v19  ;;  %1209 = vst [vmem:[#allocation10 + $0x48] sm:$0xff] %v1193_v20 }
 0x36a   : > { %1210 = vst [vmem:[#allocation10 + $0x50] sm:$0xff] %v1194_v22  ;;  %1211 = vst [vmem:[#allocation10 + $0x58] sm:$0xff] %v1195_v25 }
 0x36b   : > { %1212 = vst [vmem:[#allocation10 + $0x60] sm:$0xff] %v1196_v26  ;;  %1213 = vst [vmem:[#allocation10 + $0x68] sm:$0xff] %v1197_v28 }
 0x36c   : > { %1214 = vst [vmem:[#allocation10 + $0x70] sm:$0xff] %v1198_v29  ;;  %1215 = vst [vmem:[#allocation10 + $0x78] sm:$0xff] %v1199_v30 }
 0x36d PF: > { %p1439_p7 = scmp.ne.s32.totalorder %s2026_s28, 1 }
 0x36f   : > { %1219 = sbr.rel (%p1439_p7) target bundleno = 892 (0x37c), region = 80 }
 0x374   : > { %1220 = vst [vmem:[#allocation10] sm:$0xff] %v2330_v23  ;;  %1221 = vst [vmem:[#allocation10 + $0x8] sm:$0xff] %v2333_v17 }
 0x375   : > { %1222 = vst [vmem:[#allocation10 + $0x10] sm:$0xff] %v2336_v21  ;;  %1223 = vst [vmem:[#allocation10 + $0x18] sm:$0xff] %v2339_v27 }
 0x376   : > { %1224 = vst [vmem:[#allocation10 + $0x20] sm:$0xff] %v2342_v31  ;;  %1225 = vst [vmem:[#allocation10 + $0x28] sm:$0xff] %v2345_v35 }
 0x377   : > { %1226 = vst [vmem:[#allocation10 + $0x30] sm:$0xff] %v2348_v39  ;;  %1227 = vst [vmem:[#allocation10 + $0x38] sm:$0xff] %v2351_v43 }
 0x378   : > { %1228 = vst [vmem:[#allocation10 + $0x40] sm:$0xff] %v2354_v47  ;;  %1229 = vst [vmem:[#allocation10 + $0x48] sm:$0xff] %v2357_v51 }
 0x379   : > { %1230 = vst [vmem:[#allocation10 + $0x50] sm:$0xff] %v2360_v55  ;;  %1231 = vst [vmem:[#allocation10 + $0x58] sm:$0xff] %v2363_v59 }
 0x37a   : > { %1232 = vst [vmem:[#allocation10 + $0x60] sm:$0xff] %v1166_v63  ;;  %1233 = vst [vmem:[#allocation10 + $0x68] sm:$0xff] %v1169_v4 }
 0x37b   : > { %1234 = vst [vmem:[#allocation10 + $0x70] sm:$0xff] %v1174_v8  ;;  %1235 = vst [vmem:[#allocation10 + $0x78] sm:$0xff] %v1177_v11 }
 0x37c PF: > { %s1964_s9 = smov [#allocation10]  }
 0x37d   : > { %s1242_s23 = sshll.u32 %s1964_s9, 4  ;;  %s1243_s23 = int_to_ptr.vmem [resolvable:$true] %s1242_s23 }
 0x37e   : > { %s1882_s17 = scalar_lea.vmem %s1243_s23, 2048  ;;  %p1889_p8 = scmp.lt.s32.totalorder %s1243_s23, %s1243_s23 }
 0x37f   : > { %p1883_p11 = scmp.ne.s32.totalorder %s1243_s23, %s1882_s17  ;;  %p1890_p5 = scmp.lt.s32.totalorder %s1882_s17, %s1882_s17 }
 0x381   : > { %p1884_p4 = pnand %p1883_p11, %p1438_p6  ;;  %p1891_p10 = por %p1890_p5, %p1889_p8 }
 0x383   : > { %p1885_p9 = pneg %p1884_p4 }
 0x385   : > { %p1892_p12 = pnand %p1891_p10, %p1885_p9 }
 0x387   : > { %1895 = shalt.err (!%p1892_p12)
}
 0x388   : > { %s1965_s16 = smov 128   ;;  %s1966_s20 = smov 8  }
 0x389   : > { %1629 = dma.vmem_to_hbm [thread:$0]  (%p1438_p6), %s1243_s23, 2048, %s2428_s7, [#allocation4], %s1965_s16, %s1965_s16, %s1966_s20  }
 0x38a   : > { %1935 = dma.done.wait (%p1438_p6), [#allocation4], 2048  }
 0x38b   : > { %1937 = vsyncadd (%p1438_p6), [#allocation4], 4294965248 }
 0x38c PF: > { %s2468_s27 = sld [smem:[#allocation15_spill]]  ;;  %s2470_s24 = smov %s1944_s25 }
 0x38d   : > { %s2469_s8 = sld [smem:[#allocation16_spill]]  ;;  %s2471_s25 = smov %s1948_s26 }
 0x392   : > { %p17_p13 = scmp.ge.s32.totalorder %s2468_s27, 4  }
 0x393   : > { %s2472_s26 = smov %s2469_s8 }
 0x394   :  { %19 = sbr.rel (!%p17_p13) target bundleno = 6 (0x6), region = 132 }
 0x399   :  { %1258 = vsyncpa [#allocation3], 1 }
 0x39a   :  { %1260 = vsyncpa [#allocation3 + $0x1], 1 }
 0x39b   :  { %1261 = vsyncpa [#allocation6], 1 }
 0x39c   :  { %1262 = vsyncpa [#allocation4], 1 }
 0x39d   :  { %1264 = vsyncpa [#allocation4 + $0x1], 1 }

</bundles_post_ra>
